<compile_context>
chip_gen: v6e
topology: v6e:2x2x1
jax: 0.10.0
libtpu: 0.0.40
codegen_flags: <defaults>
</compile_context>

<pallas_src>
import functools
import math

import jax
import jax.numpy as jnp
from jax import lax
from jax.experimental import pallas as pl
from jax.experimental.pallas import tpu as pltpu

_LANE = 128
_ROW_ALIGN = 16  # bf16 sublane packing


def _round_up(x, m):
    return ((x + m - 1) // m) * m


def _gelu(v):
    # exact (erf) GELU, matching torch.nn.GELU() default
    return 0.5 * v * (1.0 + lax.erf(v * jnp.float32(1.0 / math.sqrt(2.0))))


def word_projection_kernel(
    x_ref,
    w_lm_ref, b_lm_ref,
    ln1_w_ref, ln1_b_ref,
    fc1_w_ref, fc1_b_ref, pr1_w_ref, pr1_b_ref,
    ln2_w_ref, ln2_b_ref,
    fc2_w_ref, fc2_b_ref, pr2_w_ref, pr2_b_ref,
    o_ref,
    *,
    n_valid,  # true n_embd (<= padded lane width); LN statistics use only these lanes
):
    # Hoist all small parameter reads once (JAX does not CSE broadcast_in_dim).
    b_lm = b_lm_ref[...]
    ln1_w, ln1_b = ln1_w_ref[...], ln1_b_ref[...]
    ln2_w, ln2_b = ln2_w_ref[...], ln2_b_ref[...]
    fc1_b, pr1_b = fc1_b_ref[...], pr1_b_ref[...]
    fc2_b, pr2_b = fc2_b_ref[...], pr2_b_ref[...]

    x = x_ref[...]                       # bf16 (rt, Wp)
    n_pad = o_ref.shape[-1]

    # lm: Linear(word_embd -> n_embd); bf16 operands, f32 accumulation on the MXU.
    # Padded columns of w_lm / b_lm are zero, so pad lanes of h are exactly zero.
    h = jnp.dot(x, w_lm_ref[...], preferred_element_type=jnp.float32) + b_lm

    if n_valid < n_pad:
        lane_mask = lax.broadcasted_iota(jnp.int32, (h.shape[0], n_pad), 1) < n_valid
    else:
        lane_mask = None
    inv_n = jnp.float32(1.0 / n_valid)

    def layernorm(v, w, b):
        # pad lanes of v are zero, so the sum is already over the true lanes
        mu = jnp.sum(v, axis=-1, keepdims=True) * inv_n
        d = v - mu
        if lane_mask is not None:
            d = jnp.where(lane_mask, d, 0.0)     # mask pad lanes out of the variance
        var = jnp.sum(d * d, axis=-1, keepdims=True) * inv_n
        # w, b are zero on pad lanes -> LN output is zero there as well
        return d * lax.rsqrt(var + 1e-5) * w + b

    def residual_block(v, ln_w, ln_b, fc_w_ref, fc_b, pr_w_ref, pr_b):
        # x = x + gelu(c_proj(gelu(c_fc(ln(x)))))
        y = layernorm(v, ln_w, ln_b).astype(jnp.bfloat16)
        h1 = jnp.dot(y, fc_w_ref[...], preferred_element_type=jnp.float32) + fc_b
        h1 = _gelu(h1).astype(jnp.bfloat16)
        h2 = jnp.dot(h1, pr_w_ref[...], preferred_element_type=jnp.float32) + pr_b
        return v + _gelu(h2)

    h = residual_block(h, ln1_w, ln1_b, fc1_w_ref, fc1_b, pr1_w_ref, pr1_b)
    h = residual_block(h, ln2_w, ln2_b, fc2_w_ref, fc2_b, pr2_w_ref, pr2_b)

    o_ref[...] = h.astype(o_ref.dtype)


def _pad2d(a, rows, cols):
    return jnp.pad(a, ((0, rows - a.shape[0]), (0, cols - a.shape[1])))


def word_projection(x, params, *, row_tile=256):
    """x: (B, T, word_embd) float32.  Returns (B, T, n_embd) float32."""
    B, T, word_embd = x.shape
    n_embd = params["w_lm"].shape[1]
    hidden = params["fc1_w"].shape[1]
    M = B * T

    # Lane-dense padding of every feature dim; pad lanes are exact zeros and stay zero
    # through LN / GELU / residuals (see kernel masking), then get sliced off.
    Wp = _round_up(word_embd, _LANE)
    Np = _round_up(n_embd, _LANE)
    Hp = _round_up(hidden, _LANE)

    # Row tiling: big tiles keep the MXU M-dim busy; pad rows instead of asserting.
    rt = max(_ROW_ALIGN, min(_round_up(row_tile, _ROW_ALIGN), _round_up(M, _ROW_ALIGN)))
    Mp = _round_up(M, rt)

    x2d = _pad2d(x.reshape(M, word_embd), Mp, Wp).astype(jnp.bfloat16)

    def wt(a, rows, cols):   # matmul weight: zero-pad + bf16 (MXU-native)
        return _pad2d(a, rows, cols).astype(jnp.bfloat16)

    def vec(a, cols):        # bias / LN param: (1, cols) f32 row, zero-padded
        return _pad2d(a.reshape(1, -1).astype(jnp.float32), 1, cols)

    args = (
        x2d,
        wt(params["w_lm"], Wp, Np), vec(params["b_lm"], Np),
        vec(params["ln1_w"], Np), vec(params["ln1_b"], Np),
        wt(params["fc1_w"], Np, Hp), vec(params["fc1_b"], Hp),
        wt(params["pr1_w"], Hp, Np), vec(params["pr1_b"], Np),
        vec(params["ln2_w"], Np), vec(params["ln2_b"], Np),
        wt(params["fc2_w"], Np, Hp), vec(params["fc2_b"], Hp),
        wt(params["pr2_w"], Hp, Np), vec(params["pr2_b"], Np),
    )

    # Explicit VMEM budget: bf16 weights (x2 margin to also cover a double-buffered
    # fallback) + double-buffered x/out tiles + f32 intermediates, clamped to stay
    # under v7x's 64 MiB physical VMEM.
    weight_bytes = 2 * 2 * (Wp * Np + 2 * (Np * Hp + Hp * Np))
    param_bytes = 2 * 4 * (9 * Np + 2 * Hp)
    act_bytes = 2 * (rt * Wp * 2) + 2 * (rt * Np * 4)
    scratch_bytes = rt * (4 * Np * 4 + Hp * 4 + Hp * 2)
    vmem_limit = int(min(max(weight_bytes + param_bytes + act_bytes + scratch_bytes
                             + (4 << 20), 32 << 20), 56 << 20))
    # TODO(synk): if bf16 weights alone exceed ~56 MiB (very large n_embd on v7x), add a
    # second grid axis over the hidden dim with a VMEM accumulator instead of keeping
    # every weight fully resident.

    def build(weight_pipeline_mode):
        if weight_pipeline_mode is None:
            def wspec(shape):
                return pl.BlockSpec(shape, lambda i: (0, 0))
        else:
            def wspec(shape):
                return pl.BlockSpec(shape, lambda i: (0, 0),
                                    pipeline_mode=weight_pipeline_mode)

        in_specs = [
            pl.BlockSpec((rt, Wp), lambda i: (i, 0)),            # x rows (double-buffered)
            wspec((Wp, Np)), wspec((1, Np)),                     # lm
            wspec((1, Np)), wspec((1, Np)),                      # ln_1
            wspec((Np, Hp)), wspec((1, Hp)),                     # mlp_1 c_fc
            wspec((Hp, Np)), wspec((1, Np)),                     # mlp_1 c_proj
            wspec((1, Np)), wspec((1, Np)),                      # ln_2
            wspec((Np, Hp)), wspec((1, Hp)),                     # mlp_2 c_fc
            wspec((Hp, Np)), wspec((1, Np)),                     # mlp_2 c_proj
        ]
        return pl.pallas_call(
            functools.partial(word_projection_kernel, n_valid=n_embd),
            out_shape=jax.ShapeDtypeStruct((Mp, Np), jnp.float32),
            grid_spec=pltpu.PrefetchScalarGridSpec(
                num_scalar_prefetch=0,
                grid=(Mp // rt,),
                in_specs=in_specs,
                out_specs=pl.BlockSpec((rt, Np), lambda i: (i, 0)),
            ),
            compiler_params=pltpu.CompilerParams(
                dimension_semantics=("parallel",),   # row axis independent -> 2 TCs on v7x
                vmem_limit_bytes=vmem_limit,
            ),
        )

    try:
        # Weights / params are grid-invariant: single-buffer them to halve resident VMEM.
        out = build(pl.Buffered(1))(*args)
    except Exception:
        # Fallback for environments where Buffered(1) is not supported for the main pipeline.
        out = build(None)(*args)

    return out[:M, :n_embd].reshape(B, T, n_embd)


def word_projection_ref(x, p):
    """Pure-JAX f32 reference matching the PyTorch forward."""
    h = x @ p["w_lm"] + p["b_lm"]

    def ln(v, w, b):
        mu = jnp.mean(v, -1, keepdims=True)
        var = jnp.mean(jnp.square(v - mu), -1, keepdims=True)
        return (v - mu) * lax.rsqrt(var + 1e-5) * w + b

    def mlp(v, fw, fb, pw, pb):
        return jax.nn.gelu(v @ fw + fb, approximate=False) @ pw + pb

    h = h + jax.nn.gelu(mlp(ln(h, p["ln1_w"], p["ln1_b"]),
                            p["fc1_w"], p["fc1_b"], p["pr1_w"], p["pr1_b"]),
                        approximate=False)
    h = h + jax.nn.gelu(mlp(ln(h, p["ln2_w"], p["ln2_b"]),
                            p["fc2_w"], p["fc2_b"], p["pr2_w"], p["pr2_b"]),
                        approximate=False)
    return h


def init_params(key, word_embd, n_embd):
    hidden = 4 * n_embd
    ks = jax.random.split(key, 8)
    s = 0.02
    return {
        "w_lm": s * jax.random.normal(ks[0], (word_embd, n_embd), jnp.float32),
        "b_lm": s * jax.random.normal(ks[1], (1, n_embd), jnp.float32),
        "ln1_w": jnp.ones((1, n_embd), jnp.float32),
        "ln1_b": jnp.zeros((1, n_embd), jnp.float32),
        "fc1_w": s * jax.random.normal(ks[2], (n_embd, hidden), jnp.float32),
        "fc1_b": s * jax.random.normal(ks[3], (1, hidden), jnp.float32),
        "pr1_w": s * jax.random.normal(ks[4], (hidden, n_embd), jnp.float32),
        "pr1_b": s * jax.random.normal(ks[5], (1, n_embd), jnp.float32),
        "ln2_w": jnp.ones((1, n_embd), jnp.float32),
        "ln2_b": jnp.zeros((1, n_embd), jnp.float32),
        "fc2_w": s * jax.random.normal(ks[6], (n_embd, hidden), jnp.float32),
        "fc2_b": s * jax.random.normal(ks[7], (1, hidden), jnp.float32),
        "pr2_w": s * jax.random.normal(ks[0], (hidden, n_embd), jnp.float32),
        "pr2_b": s * jax.random.normal(ks[1], (1, n_embd), jnp.float32),
    }


if __name__ == "__main__":
    B, T = 2, 8
    word_embd, n_embd = 48, 32

    key = jax.random.PRNGKey(0)
    k_x, k_p = jax.random.split(key)
    x = jax.random.normal(k_x, (B, T, word_embd), jnp.float32)
    params = init_params(k_p, word_embd, n_embd)

    out = jax.block_until_ready(word_projection(x, params))
    ref = jax.block_until_ready(word_projection_ref(x, params))

    assert out.shape == (B, T, n_embd)
    # bf16 MXU operands (f32 accumulation) vs the pure-f32 reference -> relaxed tolerance.
    assert bool(jnp.allclose(out, ref, atol=2e-2, rtol=2e-2)), \
        float(jnp.max(jnp.abs(out - ref)))
    print("KERNEL_OK")
</pallas_src>

<mosaic_0001>
module attributes {stable_mosaic.version = 11 : i64} {
  func.func @word_projection_kernel(%arg0: i32, %arg1: memref<16x128xbf16, #tpu.memory_space<vmem>>, %arg2: memref<128x128xbf16, #tpu.memory_space<vmem>>, %arg3: memref<1x128xf32, #tpu.memory_space<vmem>>, %arg4: memref<1x128xf32, #tpu.memory_space<vmem>>, %arg5: memref<1x128xf32, #tpu.memory_space<vmem>>, %arg6: memref<128x128xbf16, #tpu.memory_space<vmem>>, %arg7: memref<1x128xf32, #tpu.memory_space<vmem>>, %arg8: memref<128x128xbf16, #tpu.memory_space<vmem>>, %arg9: memref<1x128xf32, #tpu.memory_space<vmem>>, %arg10: memref<1x128xf32, #tpu.memory_space<vmem>>, %arg11: memref<1x128xf32, #tpu.memory_space<vmem>>, %arg12: memref<128x128xbf16, #tpu.memory_space<vmem>>, %arg13: memref<1x128xf32, #tpu.memory_space<vmem>>, %arg14: memref<128x128xbf16, #tpu.memory_space<vmem>>, %arg15: memref<1x128xf32, #tpu.memory_space<vmem>>, %arg16: memref<16x128xf32, #tpu.memory_space<vmem>>) attributes {dimension_semantics = [#tpu.dimension_semantics<parallel>], iteration_bounds = array<i64: 1>, scalar_prefetch = 0 : i64, scratch_operands = 0 : i64, tpu.core_type = #tpu.core_type<tc>, window_params = [{transform_indices = @transform_0, window_bounds = array<i64: 16, 128>}, {pipeline_mode = #tpu.pipeline_mode<synchronous>, transform_indices = @transform_1, window_bounds = array<i64: 128, 128>}, {pipeline_mode = #tpu.pipeline_mode<synchronous>, transform_indices = @transform_2, window_bounds = array<i64: 1, 128>}, {pipeline_mode = #tpu.pipeline_mode<synchronous>, transform_indices = @transform_3, window_bounds = array<i64: 1, 128>}, {pipeline_mode = #tpu.pipeline_mode<synchronous>, transform_indices = @transform_4, window_bounds = array<i64: 1, 128>}, {pipeline_mode = #tpu.pipeline_mode<synchronous>, transform_indices = @transform_5, window_bounds = array<i64: 128, 128>}, {pipeline_mode = #tpu.pipeline_mode<synchronous>, transform_indices = @transform_6, window_bounds = array<i64: 1, 128>}, {pipeline_mode = #tpu.pipeline_mode<synchronous>, transform_indices = @transform_7, window_bounds = array<i64: 128, 128>}, {pipeline_mode = #tpu.pipeline_mode<synchronous>, transform_indices = @transform_8, window_bounds = array<i64: 1, 128>}, {pipeline_mode = #tpu.pipeline_mode<synchronous>, transform_indices = @transform_9, window_bounds = array<i64: 1, 128>}, {pipeline_mode = #tpu.pipeline_mode<synchronous>, transform_indices = @transform_10, window_bounds = array<i64: 1, 128>}, {pipeline_mode = #tpu.pipeline_mode<synchronous>, transform_indices = @transform_11, window_bounds = array<i64: 128, 128>}, {pipeline_mode = #tpu.pipeline_mode<synchronous>, transform_indices = @transform_12, window_bounds = array<i64: 1, 128>}, {pipeline_mode = #tpu.pipeline_mode<synchronous>, transform_indices = @transform_13, window_bounds = array<i64: 128, 128>}, {pipeline_mode = #tpu.pipeline_mode<synchronous>, transform_indices = @transform_14, window_bounds = array<i64: 1, 128>}, {transform_indices = @transform_15, window_bounds = array<i64: 16, 128>}]} {
    %c0 = arith.constant 0 : index
    %c0_0 = arith.constant 0 : index
    %0 = vector.load %arg3[%c0, %c0_0] : memref<1x128xf32, #tpu.memory_space<vmem>>, vector<1x128xf32>
    %c0_1 = arith.constant 0 : index
    %c0_2 = arith.constant 0 : index
    %1 = vector.load %arg4[%c0_1, %c0_2] : memref<1x128xf32, #tpu.memory_space<vmem>>, vector<1x128xf32>
    %c0_3 = arith.constant 0 : index
    %c0_4 = arith.constant 0 : index
    %2 = vector.load %arg5[%c0_3, %c0_4] : memref<1x128xf32, #tpu.memory_space<vmem>>, vector<1x128xf32>
    %c0_5 = arith.constant 0 : index
    %c0_6 = arith.constant 0 : index
    %3 = vector.load %arg10[%c0_5, %c0_6] : memref<1x128xf32, #tpu.memory_space<vmem>>, vector<1x128xf32>
    %c0_7 = arith.constant 0 : index
    %c0_8 = arith.constant 0 : index
    %4 = vector.load %arg11[%c0_7, %c0_8] : memref<1x128xf32, #tpu.memory_space<vmem>>, vector<1x128xf32>
    %c0_9 = arith.constant 0 : index
    %c0_10 = arith.constant 0 : index
    %5 = vector.load %arg7[%c0_9, %c0_10] : memref<1x128xf32, #tpu.memory_space<vmem>>, vector<1x128xf32>
    %c0_11 = arith.constant 0 : index
    %c0_12 = arith.constant 0 : index
    %6 = vector.load %arg9[%c0_11, %c0_12] : memref<1x128xf32, #tpu.memory_space<vmem>>, vector<1x128xf32>
    %c0_13 = arith.constant 0 : index
    %c0_14 = arith.constant 0 : index
    %7 = vector.load %arg13[%c0_13, %c0_14] : memref<1x128xf32, #tpu.memory_space<vmem>>, vector<1x128xf32>
    %c0_15 = arith.constant 0 : index
    %c0_16 = arith.constant 0 : index
    %8 = vector.load %arg15[%c0_15, %c0_16] : memref<1x128xf32, #tpu.memory_space<vmem>>, vector<1x128xf32>
    %c0_17 = arith.constant 0 : index
    %c0_18 = arith.constant 0 : index
    %9 = vector.load %arg1[%c0_17, %c0_18] : memref<16x128xbf16, #tpu.memory_space<vmem>>, vector<16x128xbf16>
    %c0_19 = arith.constant 0 : index
    %c0_20 = arith.constant 0 : index
    %10 = vector.load %arg2[%c0_19, %c0_20] : memref<128x128xbf16, #tpu.memory_space<vmem>>, vector<128x128xbf16>
    %cst = arith.constant dense<0.000000e+00> : vector<16x128xf32>
    %11 = tpu.matmul %9, %10, %cst {dimension_numbers = #tpu.dot_dimension_numbers<[1], [0], [0], [1], [0, 0, 1, 1], [], []>} : vector<16x128xbf16>, vector<128x128xbf16>, vector<16x128xf32> -> vector<16x128xf32>
    %12 = vector.broadcast %0 : vector<1x128xf32> to vector<16x128xf32>
    %13 = arith.addf %11, %12 : vector<16x128xf32>
    %14 = tpu.iota {dimensions = array<i32: 1>} : vector<16x128xi32>
    %c32_i32 = arith.constant 32 : i32
    %15 = vector.broadcast %c32_i32 : i32 to vector<16x128xi32>
    %16 = arith.cmpi slt, %14, %15 : vector<16x128xi32>
    %cst_21 = arith.constant dense<0.000000e+00> : vector<16xf32>
    %17 = vector.multi_reduction <add>, %13, %cst_21 [1] : vector<16x128xf32> to vector<16xf32>
    %18 = vector.shape_cast %17 : vector<16xf32> to vector<16x1xf32>
    %cst_22 = arith.constant 3.125000e-02 : f32
    %19 = vector.broadcast %cst_22 : f32 to vector<16x1xf32>
    %20 = arith.mulf %18, %19 : vector<16x1xf32>
    %21 = vector.broadcast %20 : vector<16x1xf32> to vector<16x128xf32>
    %22 = arith.subf %13, %21 : vector<16x128xf32>
    %cst_23 = arith.constant 0.000000e+00 : f32
    %23 = vector.broadcast %cst_23 : f32 to vector<16x128xf32>
    %24 = arith.select %16, %22, %23 : vector<16x128xi1>, vector<16x128xf32>
    %25 = arith.mulf %24, %24 : vector<16x128xf32>
    %cst_24 = arith.constant dense<0.000000e+00> : vector<16xf32>
    %26 = vector.multi_reduction <add>, %25, %cst_24 [1] : vector<16x128xf32> to vector<16xf32>
    %27 = vector.shape_cast %26 : vector<16xf32> to vector<16x1xf32>
    %cst_25 = arith.constant 3.125000e-02 : f32
    %28 = vector.broadcast %cst_25 : f32 to vector<16x1xf32>
    %29 = arith.mulf %27, %28 : vector<16x1xf32>
    %cst_26 = arith.constant 9.99999974E-6 : f32
    %30 = vector.broadcast %cst_26 : f32 to vector<16x1xf32>
    %31 = arith.addf %29, %30 : vector<16x1xf32>
    %32 = math.rsqrt %31 : vector<16x1xf32>
    %33 = vector.broadcast %32 : vector<16x1xf32> to vector<16x128xf32>
    %34 = arith.mulf %24, %33 : vector<16x128xf32>
    %35 = vector.broadcast %1 : vector<1x128xf32> to vector<16x128xf32>
    %36 = arith.mulf %34, %35 : vector<16x128xf32>
    %37 = vector.broadcast %2 : vector<1x128xf32> to vector<16x128xf32>
    %38 = arith.addf %36, %37 : vector<16x128xf32>
    %39 = arith.truncf %38 : vector<16x128xf32> to vector<16x128xbf16>
    %c0_27 = arith.constant 0 : index
    %c0_28 = arith.constant 0 : index
    %40 = vector.load %arg6[%c0_27, %c0_28] : memref<128x128xbf16, #tpu.memory_space<vmem>>, vector<128x128xbf16>
    %cst_29 = arith.constant dense<0.000000e+00> : vector<16x128xf32>
    %41 = tpu.matmul %39, %40, %cst_29 {dimension_numbers = #tpu.dot_dimension_numbers<[1], [0], [0], [1], [0, 0, 1, 1], [], []>} : vector<16x128xbf16>, vector<128x128xbf16>, vector<16x128xf32> -> vector<16x128xf32>
    %42 = vector.broadcast %5 : vector<1x128xf32> to vector<16x128xf32>
    %43 = arith.addf %41, %42 : vector<16x128xf32>
    %cst_30 = arith.constant 5.000000e-01 : f32
    %44 = vector.broadcast %cst_30 : f32 to vector<16x128xf32>
    %45 = arith.mulf %44, %43 : vector<16x128xf32>
    %cst_31 = arith.constant 0.707106769 : f32
    %46 = vector.broadcast %cst_31 : f32 to vector<16x128xf32>
    %47 = arith.mulf %43, %46 : vector<16x128xf32>
    %48 = math.erf %47 : vector<16x128xf32>
    %cst_32 = arith.constant 1.000000e+00 : f32
    %49 = vector.broadcast %cst_32 : f32 to vector<16x128xf32>
    %50 = arith.addf %49, %48 : vector<16x128xf32>
    %51 = arith.mulf %45, %50 : vector<16x128xf32>
    %52 = arith.truncf %51 : vector<16x128xf32> to vector<16x128xbf16>
    %c0_33 = arith.constant 0 : index
    %c0_34 = arith.constant 0 : index
    %53 = vector.load %arg8[%c0_33, %c0_34] : memref<128x128xbf16, #tpu.memory_space<vmem>>, vector<128x128xbf16>
    %cst_35 = arith.constant dense<0.000000e+00> : vector<16x128xf32>
    %54 = tpu.matmul %52, %53, %cst_35 {dimension_numbers = #tpu.dot_dimension_numbers<[1], [0], [0], [1], [0, 0, 1, 1], [], []>} : vector<16x128xbf16>, vector<128x128xbf16>, vector<16x128xf32> -> vector<16x128xf32>
    %55 = vector.broadcast %6 : vector<1x128xf32> to vector<16x128xf32>
    %56 = arith.addf %54, %55 : vector<16x128xf32>
    %cst_36 = arith.constant 5.000000e-01 : f32
    %57 = vector.broadcast %cst_36 : f32 to vector<16x128xf32>
    %58 = arith.mulf %57, %56 : vector<16x128xf32>
    %cst_37 = arith.constant 0.707106769 : f32
    %59 = vector.broadcast %cst_37 : f32 to vector<16x128xf32>
    %60 = arith.mulf %56, %59 : vector<16x128xf32>
    %61 = math.erf %60 : vector<16x128xf32>
    %cst_38 = arith.constant 1.000000e+00 : f32
    %62 = vector.broadcast %cst_38 : f32 to vector<16x128xf32>
    %63 = arith.addf %62, %61 : vector<16x128xf32>
    %64 = arith.mulf %58, %63 : vector<16x128xf32>
    %65 = arith.addf %13, %64 : vector<16x128xf32>
    %cst_39 = arith.constant dense<0.000000e+00> : vector<16xf32>
    %66 = vector.multi_reduction <add>, %65, %cst_39 [1] : vector<16x128xf32> to vector<16xf32>
    %67 = vector.shape_cast %66 : vector<16xf32> to vector<16x1xf32>
    %cst_40 = arith.constant 3.125000e-02 : f32
    %68 = vector.broadcast %cst_40 : f32 to vector<16x1xf32>
    %69 = arith.mulf %67, %68 : vector<16x1xf32>
    %70 = vector.broadcast %69 : vector<16x1xf32> to vector<16x128xf32>
    %71 = arith.subf %65, %70 : vector<16x128xf32>
    %cst_41 = arith.constant 0.000000e+00 : f32
    %72 = vector.broadcast %cst_41 : f32 to vector<16x128xf32>
    %73 = arith.select %16, %71, %72 : vector<16x128xi1>, vector<16x128xf32>
    %74 = arith.mulf %73, %73 : vector<16x128xf32>
    %cst_42 = arith.constant dense<0.000000e+00> : vector<16xf32>
    %75 = vector.multi_reduction <add>, %74, %cst_42 [1] : vector<16x128xf32> to vector<16xf32>
    %76 = vector.shape_cast %75 : vector<16xf32> to vector<16x1xf32>
    %cst_43 = arith.constant 3.125000e-02 : f32
    %77 = vector.broadcast %cst_43 : f32 to vector<16x1xf32>
    %78 = arith.mulf %76, %77 : vector<16x1xf32>
    %cst_44 = arith.constant 9.99999974E-6 : f32
    %79 = vector.broadcast %cst_44 : f32 to vector<16x1xf32>
    %80 = arith.addf %78, %79 : vector<16x1xf32>
    %81 = math.rsqrt %80 : vector<16x1xf32>
    %82 = vector.broadcast %81 : vector<16x1xf32> to vector<16x128xf32>
    %83 = arith.mulf %73, %82 : vector<16x128xf32>
    %84 = vector.broadcast %3 : vector<1x128xf32> to vector<16x128xf32>
    %85 = arith.mulf %83, %84 : vector<16x128xf32>
    %86 = vector.broadcast %4 : vector<1x128xf32> to vector<16x128xf32>
    %87 = arith.addf %85, %86 : vector<16x128xf32>
    %88 = arith.truncf %87 : vector<16x128xf32> to vector<16x128xbf16>
    %c0_45 = arith.constant 0 : index
    %c0_46 = arith.constant 0 : index
    %89 = vector.load %arg12[%c0_45, %c0_46] : memref<128x128xbf16, #tpu.memory_space<vmem>>, vector<128x128xbf16>
    %cst_47 = arith.constant dense<0.000000e+00> : vector<16x128xf32>
    %90 = tpu.matmul %88, %89, %cst_47 {dimension_numbers = #tpu.dot_dimension_numbers<[1], [0], [0], [1], [0, 0, 1, 1], [], []>} : vector<16x128xbf16>, vector<128x128xbf16>, vector<16x128xf32> -> vector<16x128xf32>
    %91 = vector.broadcast %7 : vector<1x128xf32> to vector<16x128xf32>
    %92 = arith.addf %90, %91 : vector<16x128xf32>
    %cst_48 = arith.constant 5.000000e-01 : f32
    %93 = vector.broadcast %cst_48 : f32 to vector<16x128xf32>
    %94 = arith.mulf %93, %92 : vector<16x128xf32>
    %cst_49 = arith.constant 0.707106769 : f32
    %95 = vector.broadcast %cst_49 : f32 to vector<16x128xf32>
    %96 = arith.mulf %92, %95 : vector<16x128xf32>
    %97 = math.erf %96 : vector<16x128xf32>
    %cst_50 = arith.constant 1.000000e+00 : f32
    %98 = vector.broadcast %cst_50 : f32 to vector<16x128xf32>
    %99 = arith.addf %98, %97 : vector<16x128xf32>
    %100 = arith.mulf %94, %99 : vector<16x128xf32>
    %101 = arith.truncf %100 : vector<16x128xf32> to vector<16x128xbf16>
    %c0_51 = arith.constant 0 : index
    %c0_52 = arith.constant 0 : index
    %102 = vector.load %arg14[%c0_51, %c0_52] : memref<128x128xbf16, #tpu.memory_space<vmem>>, vector<128x128xbf16>
    %cst_53 = arith.constant dense<0.000000e+00> : vector<16x128xf32>
    %103 = tpu.matmul %101, %102, %cst_53 {dimension_numbers = #tpu.dot_dimension_numbers<[1], [0], [0], [1], [0, 0, 1, 1], [], []>} : vector<16x128xbf16>, vector<128x128xbf16>, vector<16x128xf32> -> vector<16x128xf32>
    %104 = vector.broadcast %8 : vector<1x128xf32> to vector<16x128xf32>
    %105 = arith.addf %103, %104 : vector<16x128xf32>
    %cst_54 = arith.constant 5.000000e-01 : f32
    %106 = vector.broadcast %cst_54 : f32 to vector<16x128xf32>
    %107 = arith.mulf %106, %105 : vector<16x128xf32>
    %cst_55 = arith.constant 0.707106769 : f32
    %108 = vector.broadcast %cst_55 : f32 to vector<16x128xf32>
    %109 = arith.mulf %105, %108 : vector<16x128xf32>
    %110 = math.erf %109 : vector<16x128xf32>
    %cst_56 = arith.constant 1.000000e+00 : f32
    %111 = vector.broadcast %cst_56 : f32 to vector<16x128xf32>
    %112 = arith.addf %111, %110 : vector<16x128xf32>
    %113 = arith.mulf %107, %112 : vector<16x128xf32>
    %114 = arith.addf %65, %113 : vector<16x128xf32>
    %c0_57 = arith.constant 0 : index
    %c0_58 = arith.constant 0 : index
    %115 = vector.load %arg16[%c0_57, %c0_58] : memref<16x128xf32, #tpu.memory_space<vmem>>, vector<16x128xf32>
    tpu.vector_store %arg16[%c0_57, %c0_58], %114 {strides = array<i32>} : memref<16x128xf32, #tpu.memory_space<vmem>>, vector<16x128xf32>,
    return
  }
  func.func @transform_0(%arg0: i32) -> (i32, i32) {
    %c0_i32 = arith.constant 0 : i32
    %c0_i32_0 = arith.constant 0 : i32
    return %arg0, %c0_i32 : i32, i32
  }
  func.func @transform_1(%arg0: i32) -> (i32, i32) {
    %c0_i32 = arith.constant 0 : i32
    %c0_i32_0 = arith.constant 0 : i32
    %c0_i32_1 = arith.constant 0 : i32
    return %c0_i32, %c0_i32_0 : i32, i32
  }
  func.func @transform_2(%arg0: i32) -> (i32, i32) {
    %c0_i32 = arith.constant 0 : i32
    %c0_i32_0 = arith.constant 0 : i32
    %c0_i32_1 = arith.constant 0 : i32
    return %c0_i32, %c0_i32_0 : i32, i32
  }
  func.func @transform_3(%arg0: i32) -> (i32, i32) {
    %c0_i32 = arith.constant 0 : i32
    %c0_i32_0 = arith.constant 0 : i32
    %c0_i32_1 = arith.constant 0 : i32
    return %c0_i32, %c0_i32_0 : i32, i32
  }
  func.func @transform_4(%arg0: i32) -> (i32, i32) {
    %c0_i32 = arith.constant 0 : i32
    %c0_i32_0 = arith.constant 0 : i32
    %c0_i32_1 = arith.constant 0 : i32
    return %c0_i32, %c0_i32_0 : i32, i32
  }
  func.func @transform_5(%arg0: i32) -> (i32, i32) {
    %c0_i32 = arith.constant 0 : i32
    %c0_i32_0 = arith.constant 0 : i32
    %c0_i32_1 = arith.constant 0 : i32
    return %c0_i32, %c0_i32_0 : i32, i32
  }
  func.func @transform_6(%arg0: i32) -> (i32, i32) {
    %c0_i32 = arith.constant 0 : i32
    %c0_i32_0 = arith.constant 0 : i32
    %c0_i32_1 = arith.constant 0 : i32
    return %c0_i32, %c0_i32_0 : i32, i32
  }
  func.func @transform_7(%arg0: i32) -> (i32, i32) {
    %c0_i32 = arith.constant 0 : i32
    %c0_i32_0 = arith.constant 0 : i32
    %c0_i32_1 = arith.constant 0 : i32
    return %c0_i32, %c0_i32_0 : i32, i32
  }
  func.func @transform_8(%arg0: i32) -> (i32, i32) {
    %c0_i32 = arith.constant 0 : i32
    %c0_i32_0 = arith.constant 0 : i32
    %c0_i32_1 = arith.constant 0 : i32
    return %c0_i32, %c0_i32_0 : i32, i32
  }
  func.func @transform_9(%arg0: i32) -> (i32, i32) {
    %c0_i32 = arith.constant 0 : i32
    %c0_i32_0 = arith.constant 0 : i32
    %c0_i32_1 = arith.constant 0 : i32
    return %c0_i32, %c0_i32_0 : i32, i32
  }
  func.func @transform_10(%arg0: i32) -> (i32, i32) {
    %c0_i32 = arith.constant 0 : i32
    %c0_i32_0 = arith.constant 0 : i32
    %c0_i32_1 = arith.constant 0 : i32
    return %c0_i32, %c0_i32_0 : i32, i32
  }
  func.func @transform_11(%arg0: i32) -> (i32, i32) {
    %c0_i32 = arith.constant 0 : i32
    %c0_i32_0 = arith.constant 0 : i32
    %c0_i32_1 = arith.constant 0 : i32
    return %c0_i32, %c0_i32_0 : i32, i32
  }
  func.func @transform_12(%arg0: i32) -> (i32, i32) {
    %c0_i32 = arith.constant 0 : i32
    %c0_i32_0 = arith.constant 0 : i32
    %c0_i32_1 = arith.constant 0 : i32
    return %c0_i32, %c0_i32_0 : i32, i32
  }
  func.func @transform_13(%arg0: i32) -> (i32, i32) {
    %c0_i32 = arith.constant 0 : i32
    %c0_i32_0 = arith.constant 0 : i32
    %c0_i32_1 = arith.constant 0 : i32
    return %c0_i32, %c0_i32_0 : i32, i32
  }
  func.func @transform_14(%arg0: i32) -> (i32, i32) {
    %c0_i32 = arith.constant 0 : i32
    %c0_i32_0 = arith.constant 0 : i32
    %c0_i32_1 = arith.constant 0 : i32
    return %c0_i32, %c0_i32_0 : i32, i32
  }
  func.func @transform_15(%arg0: i32) -> (i32, i32) {
    %c0_i32 = arith.constant 0 : i32
    %c0_i32_0 = arith.constant 0 : i32
    return %arg0, %c0_i32 : i32, i32
  }
}

module attributes {stable_mosaic.version = 11 : i64} {
  func.func @word_projection_kernel(%arg0: i32, %arg1: memref<16x128xbf16, #tpu.memory_space<vmem>>, %arg2: memref<128x128xbf16, #tpu.memory_space<vmem>>, %arg3: memref<1x128xf32, #tpu.memory_space<vmem>>, %arg4: memref<1x128xf32, #tpu.memory_space<vmem>>, %arg5: memref<1x128xf32, #tpu.memory_space<vmem>>, %arg6: memref<128x128xbf16, #tpu.memory_space<vmem>>, %arg7: memref<1x128xf32, #tpu.memory_space<vmem>>, %arg8: memref<128x128xbf16, #tpu.memory_space<vmem>>, %arg9: memref<1x128xf32, #tpu.memory_space<vmem>>, %arg10: memref<1x128xf32, #tpu.memory_space<vmem>>, %arg11: memref<1x128xf32, #tpu.memory_space<vmem>>, %arg12: memref<128x128xbf16, #tpu.memory_space<vmem>>, %arg13: memref<1x128xf32, #tpu.memory_space<vmem>>, %arg14: memref<128x128xbf16, #tpu.memory_space<vmem>>, %arg15: memref<1x128xf32, #tpu.memory_space<vmem>>, %arg16: memref<16x128xf32, #tpu.memory_space<vmem>>) attributes {dimension_semantics = [#tpu.dimension_semantics<parallel>], iteration_bounds = array<i64: 1>, scalar_prefetch = 0 : i64, scratch_operands = 0 : i64, tpu.core_type = #tpu.core_type<tc>, window_params = [{transform_indices = @transform_0, window_bounds = array<i64: 16, 128>}, {pipeline_mode = #tpu.pipeline_mode<synchronous>, transform_indices = @transform_1, window_bounds = array<i64: 128, 128>}, {pipeline_mode = #tpu.pipeline_mode<synchronous>, transform_indices = @transform_2, window_bounds = array<i64: 1, 128>}, {pipeline_mode = #tpu.pipeline_mode<synchronous>, transform_indices = @transform_3, window_bounds = array<i64: 1, 128>}, {pipeline_mode = #tpu.pipeline_mode<synchronous>, transform_indices = @transform_4, window_bounds = array<i64: 1, 128>}, {pipeline_mode = #tpu.pipeline_mode<synchronous>, transform_indices = @transform_5, window_bounds = array<i64: 128, 128>}, {pipeline_mode = #tpu.pipeline_mode<synchronous>, transform_indices = @transform_6, window_bounds = array<i64: 1, 128>}, {pipeline_mode = #tpu.pipeline_mode<synchronous>, transform_indices = @transform_7, window_bounds = array<i64: 128, 128>}, {pipeline_mode = #tpu.pipeline_mode<synchronous>, transform_indices = @transform_8, window_bounds = array<i64: 1, 128>}, {pipeline_mode = #tpu.pipeline_mode<synchronous>, transform_indices = @transform_9, window_bounds = array<i64: 1, 128>}, {pipeline_mode = #tpu.pipeline_mode<synchronous>, transform_indices = @transform_10, window_bounds = array<i64: 1, 128>}, {pipeline_mode = #tpu.pipeline_mode<synchronous>, transform_indices = @transform_11, window_bounds = array<i64: 128, 128>}, {pipeline_mode = #tpu.pipeline_mode<synchronous>, transform_indices = @transform_12, window_bounds = array<i64: 1, 128>}, {pipeline_mode = #tpu.pipeline_mode<synchronous>, transform_indices = @transform_13, window_bounds = array<i64: 128, 128>}, {pipeline_mode = #tpu.pipeline_mode<synchronous>, transform_indices = @transform_14, window_bounds = array<i64: 1, 128>}, {transform_indices = @transform_15, window_bounds = array<i64: 16, 128>}]} {
    %c0 = arith.constant 0 : index
    %c0_0 = arith.constant 0 : index
    %0 = vector.load %arg3[%c0, %c0_0] : memref<1x128xf32, #tpu.memory_space<vmem>>, vector<1x128xf32>
    %c0_1 = arith.constant 0 : index
    %c0_2 = arith.constant 0 : index
    %1 = vector.load %arg4[%c0_1, %c0_2] : memref<1x128xf32, #tpu.memory_space<vmem>>, vector<1x128xf32>
    %c0_3 = arith.constant 0 : index
    %c0_4 = arith.constant 0 : index
    %2 = vector.load %arg5[%c0_3, %c0_4] : memref<1x128xf32, #tpu.memory_space<vmem>>, vector<1x128xf32>
    %c0_5 = arith.constant 0 : index
    %c0_6 = arith.constant 0 : index
    %3 = vector.load %arg10[%c0_5, %c0_6] : memref<1x128xf32, #tpu.memory_space<vmem>>, vector<1x128xf32>
    %c0_7 = arith.constant 0 : index
    %c0_8 = arith.constant 0 : index
    %4 = vector.load %arg11[%c0_7, %c0_8] : memref<1x128xf32, #tpu.memory_space<vmem>>, vector<1x128xf32>
    %c0_9 = arith.constant 0 : index
    %c0_10 = arith.constant 0 : index
    %5 = vector.load %arg7[%c0_9, %c0_10] : memref<1x128xf32, #tpu.memory_space<vmem>>, vector<1x128xf32>
    %c0_11 = arith.constant 0 : index
    %c0_12 = arith.constant 0 : index
    %6 = vector.load %arg9[%c0_11, %c0_12] : memref<1x128xf32, #tpu.memory_space<vmem>>, vector<1x128xf32>
    %c0_13 = arith.constant 0 : index
    %c0_14 = arith.constant 0 : index
    %7 = vector.load %arg13[%c0_13, %c0_14] : memref<1x128xf32, #tpu.memory_space<vmem>>, vector<1x128xf32>
    %c0_15 = arith.constant 0 : index
    %c0_16 = arith.constant 0 : index
    %8 = vector.load %arg15[%c0_15, %c0_16] : memref<1x128xf32, #tpu.memory_space<vmem>>, vector<1x128xf32>
    %c0_17 = arith.constant 0 : index
    %c0_18 = arith.constant 0 : index
    %9 = vector.load %arg1[%c0_17, %c0_18] : memref<16x128xbf16, #tpu.memory_space<vmem>>, vector<16x128xbf16>
    %c0_19 = arith.constant 0 : index
    %c0_20 = arith.constant 0 : index
    %10 = vector.load %arg2[%c0_19, %c0_20] : memref<128x128xbf16, #tpu.memory_space<vmem>>, vector<128x128xbf16>
    %cst = arith.constant dense<0.000000e+00> : vector<16x128xf32>
    %11 = tpu.matmul %9, %10, %cst {dimension_numbers = #tpu.dot_dimension_numbers<[1], [0], [0], [1], [0, 0, 1, 1], [], []>} : vector<16x128xbf16>, vector<128x128xbf16>, vector<16x128xf32> -> vector<16x128xf32>
    %12 = vector.broadcast %0 : vector<1x128xf32> to vector<16x128xf32>
    %13 = arith.addf %11, %12 : vector<16x128xf32>
    %14 = tpu.iota {dimensions = array<i32: 1>} : vector<16x128xi32>
    %c32_i32 = arith.constant 32 : i32
    %15 = vector.broadcast %c32_i32 : i32 to vector<16x128xi32>
    %16 = arith.cmpi slt, %14, %15 : vector<16x128xi32>
    %cst_21 = arith.constant dense<0.000000e+00> : vector<16xf32>
    %17 = vector.multi_reduction <add>, %13, %cst_21 [1] : vector<16x128xf32> to vector<16xf32>
    %18 = vector.shape_cast %17 : vector<16xf32> to vector<16x1xf32>
    %cst_22 = arith.constant 3.125000e-02 : f32
    %19 = vector.broadcast %cst_22 : f32 to vector<16x1xf32>
    %20 = arith.mulf %18, %19 : vector<16x1xf32>
    %21 = vector.broadcast %20 : vector<16x1xf32> to vector<16x128xf32>
    %22 = arith.subf %13, %21 : vector<16x128xf32>
    %cst_23 = arith.constant 0.000000e+00 : f32
    %23 = vector.broadcast %cst_23 : f32 to vector<16x128xf32>
    %24 = arith.select %16, %22, %23 : vector<16x128xi1>, vector<16x128xf32>
    %25 = arith.mulf %24, %24 : vector<16x128xf32>
    %cst_24 = arith.constant dense<0.000000e+00> : vector<16xf32>
    %26 = vector.multi_reduction <add>, %25, %cst_24 [1] : vector<16x128xf32> to vector<16xf32>
    %27 = vector.shape_cast %26 : vector<16xf32> to vector<16x1xf32>
    %cst_25 = arith.constant 3.125000e-02 : f32
    %28 = vector.broadcast %cst_25 : f32 to vector<16x1xf32>
    %29 = arith.mulf %27, %28 : vector<16x1xf32>
    %cst_26 = arith.constant 9.99999974E-6 : f32
    %30 = vector.broadcast %cst_26 : f32 to vector<16x1xf32>
    %31 = arith.addf %29, %30 : vector<16x1xf32>
    %32 = math.rsqrt %31 : vector<16x1xf32>
    %33 = vector.broadcast %32 : vector<16x1xf32> to vector<16x128xf32>
    %34 = arith.mulf %24, %33 : vector<16x128xf32>
    %35 = vector.broadcast %1 : vector<1x128xf32> to vector<16x128xf32>
    %36 = arith.mulf %34, %35 : vector<16x128xf32>
    %37 = vector.broadcast %2 : vector<1x128xf32> to vector<16x128xf32>
    %38 = arith.addf %36, %37 : vector<16x128xf32>
    %39 = arith.truncf %38 : vector<16x128xf32> to vector<16x128xbf16>
    %c0_27 = arith.constant 0 : index
    %c0_28 = arith.constant 0 : index
    %40 = vector.load %arg6[%c0_27, %c0_28] : memref<128x128xbf16, #tpu.memory_space<vmem>>, vector<128x128xbf16>
    %cst_29 = arith.constant dense<0.000000e+00> : vector<16x128xf32>
    %41 = tpu.matmul %39, %40, %cst_29 {dimension_numbers = #tpu.dot_dimension_numbers<[1], [0], [0], [1], [0, 0, 1, 1], [], []>} : vector<16x128xbf16>, vector<128x128xbf16>, vector<16x128xf32> -> vector<16x128xf32>
    %42 = vector.broadcast %5 : vector<1x128xf32> to vector<16x128xf32>
    %43 = arith.addf %41, %42 : vector<16x128xf32>
    %cst_30 = arith.constant 5.000000e-01 : f32
    %44 = vector.broadcast %cst_30 : f32 to vector<16x128xf32>
    %45 = arith.mulf %44, %43 : vector<16x128xf32>
    %cst_31 = arith.constant 0.707106769 : f32
    %46 = vector.broadcast %cst_31 : f32 to vector<16x128xf32>
    %47 = arith.mulf %43, %46 : vector<16x128xf32>
    %48 = math.erf %47 : vector<16x128xf32>
    %cst_32 = arith.constant 1.000000e+00 : f32
    %49 = vector.broadcast %cst_32 : f32 to vector<16x128xf32>
    %50 = arith.addf %49, %48 : vector<16x128xf32>
    %51 = arith.mulf %45, %50 : vector<16x128xf32>
    %52 = arith.truncf %51 : vector<16x128xf32> to vector<16x128xbf16>
    %c0_33 = arith.constant 0 : index
    %c0_34 = arith.constant 0 : index
    %53 = vector.load %arg8[%c0_33, %c0_34] : memref<128x128xbf16, #tpu.memory_space<vmem>>, vector<128x128xbf16>
    %cst_35 = arith.constant dense<0.000000e+00> : vector<16x128xf32>
    %54 = tpu.matmul %52, %53, %cst_35 {dimension_numbers = #tpu.dot_dimension_numbers<[1], [0], [0], [1], [0, 0, 1, 1], [], []>} : vector<16x128xbf16>, vector<128x128xbf16>, vector<16x128xf32> -> vector<16x128xf32>
    %55 = vector.broadcast %6 : vector<1x128xf32> to vector<16x128xf32>
    %56 = arith.addf %54, %55 : vector<16x128xf32>
    %cst_36 = arith.constant 5.000000e-01 : f32
    %57 = vector.broadcast %cst_36 : f32 to vector<16x128xf32>
    %58 = arith.mulf %57, %56 : vector<16x128xf32>
    %cst_37 = arith.constant 0.707106769 : f32
    %59 = vector.broadcast %cst_37 : f32 to vector<16x128xf32>
    %60 = arith.mulf %56, %59 : vector<16x128xf32>
    %61 = math.erf %60 : vector<16x128xf32>
    %cst_38 = arith.constant 1.000000e+00 : f32
    %62 = vector.broadcast %cst_38 : f32 to vector<16x128xf32>
    %63 = arith.addf %62, %61 : vector<16x128xf32>
    %64 = arith.mulf %58, %63 : vector<16x128xf32>
    %65 = arith.addf %13, %64 : vector<16x128xf32>
    %cst_39 = arith.constant dense<0.000000e+00> : vector<16xf32>
    %66 = vector.multi_reduction <add>, %65, %cst_39 [1] : vector<16x128xf32> to vector<16xf32>
    %67 = vector.shape_cast %66 : vector<16xf32> to vector<16x1xf32>
    %cst_40 = arith.constant 3.125000e-02 : f32
    %68 = vector.broadcast %cst_40 : f32 to vector<16x1xf32>
    %69 = arith.mulf %67, %68 : vector<16x1xf32>
    %70 = vector.broadcast %69 : vector<16x1xf32> to vector<16x128xf32>
    %71 = arith.subf %65, %70 : vector<16x128xf32>
    %cst_41 = arith.constant 0.000000e+00 : f32
    %72 = vector.broadcast %cst_41 : f32 to vector<16x128xf32>
    %73 = arith.select %16, %71, %72 : vector<16x128xi1>, vector<16x128xf32>
    %74 = arith.mulf %73, %73 : vector<16x128xf32>
    %cst_42 = arith.constant dense<0.000000e+00> : vector<16xf32>
    %75 = vector.multi_reduction <add>, %74, %cst_42 [1] : vector<16x128xf32> to vector<16xf32>
    %76 = vector.shape_cast %75 : vector<16xf32> to vector<16x1xf32>
    %cst_43 = arith.constant 3.125000e-02 : f32
    %77 = vector.broadcast %cst_43 : f32 to vector<16x1xf32>
    %78 = arith.mulf %76, %77 : vector<16x1xf32>
    %cst_44 = arith.constant 9.99999974E-6 : f32
    %79 = vector.broadcast %cst_44 : f32 to vector<16x1xf32>
    %80 = arith.addf %78, %79 : vector<16x1xf32>
    %81 = math.rsqrt %80 : vector<16x1xf32>
    %82 = vector.broadcast %81 : vector<16x1xf32> to vector<16x128xf32>
    %83 = arith.mulf %73, %82 : vector<16x128xf32>
    %84 = vector.broadcast %3 : vector<1x128xf32> to vector<16x128xf32>
    %85 = arith.mulf %83, %84 : vector<16x128xf32>
    %86 = vector.broadcast %4 : vector<1x128xf32> to vector<16x128xf32>
    %87 = arith.addf %85, %86 : vector<16x128xf32>
    %88 = arith.truncf %87 : vector<16x128xf32> to vector<16x128xbf16>
    %c0_45 = arith.constant 0 : index
    %c0_46 = arith.constant 0 : index
    %89 = vector.load %arg12[%c0_45, %c0_46] : memref<128x128xbf16, #tpu.memory_space<vmem>>, vector<128x128xbf16>
    %cst_47 = arith.constant dense<0.000000e+00> : vector<16x128xf32>
    %90 = tpu.matmul %88, %89, %cst_47 {dimension_numbers = #tpu.dot_dimension_numbers<[1], [0], [0], [1], [0, 0, 1, 1], [], []>} : vector<16x128xbf16>, vector<128x128xbf16>, vector<16x128xf32> -> vector<16x128xf32>
    %91 = vector.broadcast %7 : vector<1x128xf32> to vector<16x128xf32>
    %92 = arith.addf %90, %91 : vector<16x128xf32>
    %cst_48 = arith.constant 5.000000e-01 : f32
    %93 = vector.broadcast %cst_48 : f32 to vector<16x128xf32>
    %94 = arith.mulf %93, %92 : vector<16x128xf32>
    %cst_49 = arith.constant 0.707106769 : f32
    %95 = vector.broadcast %cst_49 : f32 to vector<16x128xf32>
    %96 = arith.mulf %92, %95 : vector<16x128xf32>
    %97 = math.erf %96 : vector<16x128xf32>
    %cst_50 = arith.constant 1.000000e+00 : f32
    %98 = vector.broadcast %cst_50 : f32 to vector<16x128xf32>
    %99 = arith.addf %98, %97 : vector<16x128xf32>
    %100 = arith.mulf %94, %99 : vector<16x128xf32>
    %101 = arith.truncf %100 : vector<16x128xf32> to vector<16x128xbf16>
    %c0_51 = arith.constant 0 : index
    %c0_52 = arith.constant 0 : index
    %102 = vector.load %arg14[%c0_51, %c0_52] : memref<128x128xbf16, #tpu.memory_space<vmem>>, vector<128x128xbf16>
    %cst_53 = arith.constant dense<0.000000e+00> : vector<16x128xf32>
    %103 = tpu.matmul %101, %102, %cst_53 {dimension_numbers = #tpu.dot_dimension_numbers<[1], [0], [0], [1], [0, 0, 1, 1], [], []>} : vector<16x128xbf16>, vector<128x128xbf16>, vector<16x128xf32> -> vector<16x128xf32>
    %104 = vector.broadcast %8 : vector<1x128xf32> to vector<16x128xf32>
    %105 = arith.addf %103, %104 : vector<16x128xf32>
    %cst_54 = arith.constant 5.000000e-01 : f32
    %106 = vector.broadcast %cst_54 : f32 to vector<16x128xf32>
    %107 = arith.mulf %106, %105 : vector<16x128xf32>
    %cst_55 = arith.constant 0.707106769 : f32
    %108 = vector.broadcast %cst_55 : f32 to vector<16x128xf32>
    %109 = arith.mulf %105, %108 : vector<16x128xf32>
    %110 = math.erf %109 : vector<16x128xf32>
    %cst_56 = arith.constant 1.000000e+00 : f32
    %111 = vector.broadcast %cst_56 : f32 to vector<16x128xf32>
    %112 = arith.addf %111, %110 : vector<16x128xf32>
    %113 = arith.mulf %107, %112 : vector<16x128xf32>
    %114 = arith.addf %65, %113 : vector<16x128xf32>
    %c0_57 = arith.constant 0 : index
    %c0_58 = arith.constant 0 : index
    %115 = vector.load %arg16[%c0_57, %c0_58] : memref<16x128xf32, #tpu.memory_space<vmem>>, vector<16x128xf32>
    tpu.vector_store %arg16[%c0_57, %c0_58], %114 {strides = array<i32>} : memref<16x128xf32, #tpu.memory_space<vmem>>, vector<16x128xf32>,
    return
  }
  func.func @transform_0(%arg0: i32) -> (i32, i32) {
    %c0_i32 = arith.constant 0 : i32
    %c0_i32_0 = arith.constant 0 : i32
    return %arg0, %c0_i32 : i32, i32
  }
  func.func @transform_1(%arg0: i32) -> (i32, i32) {
    %c0_i32 = arith.constant 0 : i32
    %c0_i32_0 = arith.constant 0 : i32
    %c0_i32_1 = arith.constant 0 : i32
    return %c0_i32, %c0_i32_0 : i32, i32
  }
  func.func @transform_2(%arg0: i32) -> (i32, i32) {
    %c0_i32 = arith.constant 0 : i32
    %c0_i32_0 = arith.constant 0 : i32
    %c0_i32_1 = arith.constant 0 : i32
    return %c0_i32, %c0_i32_0 : i32, i32
  }
  func.func @transform_3(%arg0: i32) -> (i32, i32) {
    %c0_i32 = arith.constant 0 : i32
    %c0_i32_0 = arith.constant 0 : i32
    %c0_i32_1 = arith.constant 0 : i32
    return %c0_i32, %c0_i32_0 : i32, i32
  }
  func.func @transform_4(%arg0: i32) -> (i32, i32) {
    %c0_i32 = arith.constant 0 : i32
    %c0_i32_0 = arith.constant 0 : i32
    %c0_i32_1 = arith.constant 0 : i32
    return %c0_i32, %c0_i32_0 : i32, i32
  }
  func.func @transform_5(%arg0: i32) -> (i32, i32) {
    %c0_i32 = arith.constant 0 : i32
    %c0_i32_0 = arith.constant 0 : i32
    %c0_i32_1 = arith.constant 0 : i32
    return %c0_i32, %c0_i32_0 : i32, i32
  }
  func.func @transform_6(%arg0: i32) -> (i32, i32) {
    %c0_i32 = arith.constant 0 : i32
    %c0_i32_0 = arith.constant 0 : i32
    %c0_i32_1 = arith.constant 0 : i32
    return %c0_i32, %c0_i32_0 : i32, i32
  }
  func.func @transform_7(%arg0: i32) -> (i32, i32) {
    %c0_i32 = arith.constant 0 : i32
    %c0_i32_0 = arith.constant 0 : i32
    %c0_i32_1 = arith.constant 0 : i32
    return %c0_i32, %c0_i32_0 : i32, i32
  }
  func.func @transform_8(%arg0: i32) -> (i32, i32) {
    %c0_i32 = arith.constant 0 : i32
    %c0_i32_0 = arith.constant 0 : i32
    %c0_i32_1 = arith.constant 0 : i32
    return %c0_i32, %c0_i32_0 : i32, i32
  }
  func.func @transform_9(%arg0: i32) -> (i32, i32) {
    %c0_i32 = arith.constant 0 : i32
    %c0_i32_0 = arith.constant 0 : i32
    %c0_i32_1 = arith.constant 0 : i32
    return %c0_i32, %c0_i32_0 : i32, i32
  }
  func.func @transform_10(%arg0: i32) -> (i32, i32) {
    %c0_i32 = arith.constant 0 : i32
    %c0_i32_0 = arith.constant 0 : i32
    %c0_i32_1 = arith.constant 0 : i32
    return %c0_i32, %c0_i32_0 : i32, i32
  }
  func.func @transform_11(%arg0: i32) -> (i32, i32) {
    %c0_i32 = arith.constant 0 : i32
    %c0_i32_0 = arith.constant 0 : i32
    %c0_i32_1 = arith.constant 0 : i32
    return %c0_i32, %c0_i32_0 : i32, i32
  }
  func.func @transform_12(%arg0: i32) -> (i32, i32) {
    %c0_i32 = arith.constant 0 : i32
    %c0_i32_0 = arith.constant 0 : i32
    %c0_i32_1 = arith.constant 0 : i32
    return %c0_i32, %c0_i32_0 : i32, i32
  }
  func.func @transform_13(%arg0: i32) -> (i32, i32) {
    %c0_i32 = arith.constant 0 : i32
    %c0_i32_0 = arith.constant 0 : i32
    %c0_i32_1 = arith.constant 0 : i32
    return %c0_i32, %c0_i32_0 : i32, i32
  }
  func.func @transform_14(%arg0: i32) -> (i32, i32) {
    %c0_i32 = arith.constant 0 : i32
    %c0_i32_0 = arith.constant 0 : i32
    %c0_i32_1 = arith.constant 0 : i32
    return %c0_i32, %c0_i32_0 : i32, i32
  }
  func.func @transform_15(%arg0: i32) -> (i32, i32) {
    %c0_i32 = arith.constant 0 : i32
    %c0_i32_0 = arith.constant 0 : i32
    return %arg0, %c0_i32 : i32, i32
  }
}

</mosaic_0001>

<bundles_post_ra>
// kernel: tpu_custom_call.1
= control target key start
LH: loop header
LB: loop body
LE: loop exit
PB: predicated region body
PF: predicated region fallthrough
CT: control target
= control target key end

     0   :  { %20 = vsyncpa [#allocation3], 0  ;;  %s1522_s0 = inlined_call_operand.hbm [shape: bf16[16,128], index: 0, kind: input, shape index: {}]   ;;  %s1523_s1 = inlined_call_operand.hbm [shape: bf16[128,128], index: 1, kind: input, shape index: {}]   ;;  %s1524_s2 = inlined_call_operand.vmem [shape: f32[1,128], index: 2, kind: input, shape index: {}]   ;;  %s1525_s3 = inlined_call_operand.vmem [shape: f32[1,128], index: 3, kind: input, shape index: {}]   ;;  %s1526_s4 = inlined_call_operand.vmem [shape: f32[1,128], index: 4, kind: input, shape index: {}]   ;;  %s1527_s5 = inlined_call_operand.hbm [shape: bf16[128,128], index: 5, kind: input, shape index: {}]   ;;  %s1528_s6 = inlined_call_operand.vmem [shape: f32[1,128], index: 6, kind: input, shape index: {}]   ;;  %s1529_s7 = inlined_call_operand.hbm [shape: bf16[128,128], index: 7, kind: input, shape index: {}]   ;;  %s1530_s8 = inlined_call_operand.vmem [shape: f32[1,128], index: 8, kind: input, shape index: {}]   ;;  %s1531_s9 = inlined_call_operand.vmem [shape: f32[1,128], index: 9, kind: input, shape index: {}]   ;;  %s1532_s10 = inlined_call_operand.vmem [shape: f32[1,128], index: 10, kind: input, shape index: {}]   ;;  %s1533_s11 = inlined_call_operand.hbm [shape: bf16[128,128], index: 11, kind: input, shape index: {}]   ;;  %s1534_s12 = inlined_call_operand.vmem [shape: f32[1,128], index: 12, kind: input, shape index: {}]   ;;  %s1535_s13 = inlined_call_operand.hbm [shape: bf16[128,128], index: 13, kind: input, shape index: {}]   ;;  %s1536_s14 = inlined_call_operand.vmem [shape: f32[1,128], index: 14, kind: input, shape index: {}]   ;;  %s1537_s15 = inlined_call_operand.hbm [shape: f32[16,128], index: 15, kind: output, shape index: {}]  }
   0x1   :  { %21 = vsyncpa [#allocation6], 0 }
   0x2   :  { %22 = vsyncpa [#allocation9], 0 }
   0x3   :  { %23 = vsyncpa [#allocation12], 0 }
   0x4   :  { %24 = vsyncpa [#allocation4], 0  ;;  %s1282_s18 = smov [#allocation5]   ;;  %s1283_s20 = smov [#allocation8]  }
   0x5   :  { %s42_s19 = sshll.u32 %s1282_s18, 4  ;;  %s74_s21 = sshll.u32 %s1283_s20, 4  ;;  %s43_s19 = int_to_ptr.vmem [resolvable:$true] %s42_s19  ;;  %s75_s21 = int_to_ptr.vmem [resolvable:$true] %s74_s21 }
   0x6   :  { %s1140_s22 = scalar_lea.vmem %s43_s19, 1024  ;;  %p1145_p1 = scmp.lt.s32.totalorder %s43_s19, %s43_s19 }
   0x7   :  { %p1141_p0 = scmp.ne.s32.totalorder %s43_s19, %s1140_s22  ;;  %p1146_p2 = scmp.lt.s32.totalorder %s1140_s22, %s1140_s22 }
   0x9   :  { %p1147_p3 = por %p1146_p2, %p1145_p1 }
   0xb   :  { %p1148_p4 = pnand %p1147_p3, %p1141_p0 }
   0xd   :  { %1151 = shalt.err (!%p1148_p4)
}
   0xe   :  { %s1284_s23 = smov 64   ;;  %s1285_s24 = smov 4  }
   0xf   :  { %48 = dma.hbm_to_vmem [thread:$0]  %s1523_s1, 1024, %s43_s19, [#allocation6], %s1284_s23, %s1284_s23, %s1285_s24  }
  0x10   :  { %s1160_s27 = scalar_lea.vmem %s75_s21, 1024  ;;  %p1165_p6 = scmp.lt.s32.totalorder %s75_s21, %s75_s21 }
  0x11   :  { %p1161_p5 = scmp.ne.s32.totalorder %s75_s21, %s1160_s27  ;;  %p1166_p7 = scmp.lt.s32.totalorder %s1160_s27, %s1160_s27 }
  0x13   :  { %p1167_p8 = por %p1166_p7, %p1165_p6 }
  0x15   :  { %p1168_p9 = pnand %p1167_p8, %p1161_p5 }
  0x17   :  { %1171 = shalt.err (!%p1168_p9)
}
  0x18   :  { %80 = dma.hbm_to_vmem [thread:$0]  %s1529_s7, 1024, %s75_s21, [#allocation9], %s1284_s23, %s1284_s23, %s1285_s24  }
  0x19   :  { %s1286_s30 = smov [#allocation2]   ;;  %s1287_s17 = smov [#allocation7]  }
  0x1a   :  { %s30_s16 = sshll.u32 %s1286_s30, 4  ;;  %s60_s18 = sshll.u32 %s1287_s17, 4  ;;  %s31_s16 = int_to_ptr.vmem [resolvable:$true] %s30_s16  ;;  %s61_s18 = int_to_ptr.vmem [resolvable:$true] %s60_s18 }
  0x1b   :  { %s1180_s1 = scalar_lea.vmem %s31_s16, 128  ;;  %p1185_p11 = scmp.lt.s32.totalorder %s31_s16, %s31_s16 }
  0x1c   :  { %p1181_p10 = scmp.ne.s32.totalorder %s31_s16, %s1180_s1  ;;  %p1186_p12 = scmp.lt.s32.totalorder %s1180_s1, %s1180_s1 }
  0x1e   :  { %p1187_p13 = por %p1186_p12, %p1185_p11 }
  0x20   :  { %p1188_p0 = pnand %p1187_p13, %p1181_p10 }
  0x22   :  { %1191 = shalt.err (!%p1188_p0)
}
  0x23   :  { %36 = dma.hbm_to_vmem [thread:$0]  %s1522_s0, 128, %s31_s16, [#allocation3], %s1284_s23, %s1284_s23, %s1285_s24  }
  0x24   :  { %s1200_s7 = scalar_lea.vmem %s61_s18, 1024  ;;  %p1205_p2 = scmp.lt.s32.totalorder %s61_s18, %s61_s18 }
  0x25   :  { %p1201_p1 = scmp.ne.s32.totalorder %s61_s18, %s1200_s7  ;;  %p1206_p3 = scmp.lt.s32.totalorder %s1200_s7, %s1200_s7 }
  0x27   :  { %p1207_p4 = por %p1206_p3, %p1205_p2 }
  0x29   :  { %p1208_p5 = pnand %p1207_p4, %p1201_p1 }
  0x2b   :  { %1211 = shalt.err (!%p1208_p5)
}
  0x2c   :  { %66 = dma.hbm_to_vmem [thread:$0]  %s1527_s5, 1024, %s61_s18, [#allocation6], %s1284_s23, %s1284_s23, %s1285_s24  }
  0x2d   :  { %s1288_s25 = smov [#allocation10]   ;;  %s1289_s27 = smov [#allocation11]  }
  0x2e   :  { %s92_s26 = sshll.u32 %s1288_s25, 4  ;;  %s106_s28 = sshll.u32 %s1289_s27, 4  ;;  %s93_s26 = int_to_ptr.vmem [resolvable:$true] %s92_s26  ;;  %s107_s28 = int_to_ptr.vmem [resolvable:$true] %s106_s28 }
  0x2f   :  { %s1220_s0 = scalar_lea.vmem %s93_s26, 1024  ;;  %p1225_p7 = scmp.lt.s32.totalorder %s93_s26, %s93_s26 }
  0x30   :  { %p1221_p6 = scmp.ne.s32.totalorder %s93_s26, %s1220_s0  ;;  %p1226_p8 = scmp.lt.s32.totalorder %s1220_s0, %s1220_s0 }
  0x32   :  { %p1227_p9 = por %p1226_p8, %p1225_p7 }
  0x34   :  { %p1228_p10 = pnand %p1227_p9, %p1221_p6 }
  0x36   :  { %1231 = shalt.err (!%p1228_p10)
}
  0x37   :  { %98 = dma.hbm_to_vmem [thread:$0]  %s1533_s11, 1024, %s93_s26, [#allocation9], %s1284_s23, %s1284_s23, %s1285_s24  }
  0x38   :  { %s1240_s5 = scalar_lea.vmem %s107_s28, 1024  ;;  %p1245_p12 = scmp.lt.s32.totalorder %s107_s28, %s107_s28 }
  0x39   :  { %p1241_p11 = scmp.ne.s32.totalorder %s107_s28, %s1240_s5  ;;  %p1246_p13 = scmp.lt.s32.totalorder %s1240_s5, %s1240_s5 }
  0x3b   :  { %p1247_p0 = por %p1246_p13, %p1245_p12 }
  0x3d   :  { %p1248_p1 = pnand %p1247_p0, %p1241_p11 }
  0x3f   :  { %1251 = shalt.err (!%p1248_p1)
}
  0x40   :  { %112 = dma.hbm_to_vmem [thread:$0]  %s1535_s13, 1024, %s107_s28, [#allocation12], %s1284_s23, %s1284_s23, %s1285_s24  }
  0x41   :  { %1272 = dma.done.wait [#allocation3], 128  }
  0x42   :  { %1273 = vsyncadd [#allocation3], 4294967168 }
  0x43   :  { %1274 = dma.done.wait [#allocation6], 2048  }
  0x44   :  { %1275 = vsyncadd [#allocation6], 4294965248 }
  0x45   :  { %1276 = dma.done.wait [#allocation9], 2048  }
  0x46   :  { %1277 = vsyncadd [#allocation9], 4294965248 }
  0x47   :  { %1278 = dma.done.wait [#allocation12], 1024  }
  0x48   :  { %1279 = vsyncadd [#allocation12], 4294966272  ;;  %v1290_v0 = vmov 0.0   ;;  %vm1291_vm0 = vmmov 0   ;;  %v1067_v1 = vld [vmem:[#allocation5 + $0x38] sm:$0xff]   ;;  %v1068_v2 = vld [vmem:[#allocation5 + $0x30] sm:$0xff]   ;;  %v262_v18 = vlaneseq }
  0x49   :  { %954 = vmatprep.subr.bf16.mxu0 %v1290_v0  ;;  %970 = vmatprep.mubr.msk.bf16.mxu0 %vm1291_vm0, %v1290_v0  ;;  %v1069_v3 = vld [vmem:[#allocation5 + $0x28] sm:$0xff]   ;;  %v1070_v4 = vld [vmem:[#allocation5 + $0x20] sm:$0xff]   ;;  %v1071_v5 = vld [vmem:[#allocation5 + $0x18] sm:$0xff]  }
  0x4a   :  { %974 = vmatprep.subr.bf16.mxu1 %v1290_v0  ;;  %990 = vmatprep.mubr.msk.bf16.mxu1 %vm1291_vm0, %v1290_v0  ;;  %v1072_v6 = vld [vmem:[#allocation5 + $0x10] sm:$0xff]   ;;  %v1073_v7 = vld [vmem:[#allocation5 + $0x8] sm:$0xff]   ;;  %v1074_v8 = vld [vmem:[#allocation5] sm:$0xff]   ;;  %v1437_v19 = vand.u32 127, %v262_v18 }
  0x4b   :  { %955 = vmatpush3.bf16.msra.mxu0 %v1067_v1  ;;  %v1075_v9 = vld [vmem:[#allocation2] sm:$0xff]   ;;  %v1077_v30 = vld [vmem:[#allocation7 + $0x30] sm:$0xff]   ;;  %v1078_v31 = vld [vmem:[#allocation7 + $0x28] sm:$0xff]  }
  0x4c   :  { %956 = vmatprep.subr.bf16.mxu0 %v1290_v0  ;;  %v859_v10 = vld [vmem:[%s1524_s2] ss:$0 sm:$0xff]  ;;  %vm264_vm1 = vcmp.lt.s32.totalorder %v1437_v19, 32  ;;  %v1079_v32 = vld [vmem:[#allocation7 + $0x20] sm:$0xff]   ;;  %v1081_v34 = vld [vmem:[#allocation7 + $0x10] sm:$0xff]  }
  0x4d   :  { %v1076_v17 = vld [vmem:[#allocation7 + $0x38] sm:$0xff]   ;;  %v1082_v35 = vld [vmem:[#allocation7 + $0x8] sm:$0xff]   ;;  %v1083_v36 = vld [vmem:[#allocation7] sm:$0xff]  }
  0x4e   :  { %975 = vmatpush3.bf16.msra.mxu1 %v1076_v17  ;;  %v1080_v33 = vld [vmem:[#allocation7 + $0x18] sm:$0xff]   ;;  %v1085_v55 = vld [vmem:[#allocation8 + $0x30] sm:$0xff]   ;;  %v1086_v56 = vld [vmem:[#allocation8 + $0x28] sm:$0xff]  }
  0x4f   :  { %957 = vmatpush3.bf16.msra.mxu0 %v1068_v2  ;;  %976 = vmatprep.subr.bf16.mxu1 %v1290_v0  ;;  %v1084_v37 = vld [vmem:[#allocation8 + $0x38] sm:$0xff]   ;;  %v1087_v57 = vld [vmem:[#allocation8 + $0x20] sm:$0xff]   ;;  %v1089_v59 = vld [vmem:[#allocation8 + $0x10] sm:$0xff]  }
  0x50   :  { %958 = vmatprep.subr.bf16.mxu0 %v1290_v0  ;;  %v869_v46 = vld [vmem:[%s1525_s3] ss:$0 sm:$0xff]  ;;  %v1090_v60 = vld [vmem:[#allocation8 + $0x8] sm:$0xff]   ;;  %v1091_v61 = vld [vmem:[#allocation8] sm:$0xff]  }
  0x51   :  { %v870_v50 = vld [vmem:[%s1526_s4] ss:$0 sm:$0xff]  ;;  %v1098_v19 = vld [vmem:[#allocation10 + $0x8] sm:$0xff]  }
  0x52   :  { %977 = vmatpush3.bf16.msra.mxu1 %v1077_v30  ;;  %v1088_v58 = vld [vmem:[#allocation8 + $0x18] sm:$0xff]  }
  0x53   :  { %959 = vmatpush3.bf16.msra.mxu0 %v1069_v3  ;;  %978 = vmatprep.subr.bf16.mxu1 %v1290_v0  ;;  %v871_v62 = vld [vmem:[%s1528_s6] ss:$0 sm:$0xff] }
  0x54   :  { %960 = vmatprep.subr.bf16.mxu0 %v1290_v0 }
  0x56   :  { %979 = vmatpush3.bf16.msra.mxu1 %v1078_v31 }
  0x57   :  { %961 = vmatpush3.bf16.msra.mxu0 %v1070_v4  ;;  %980 = vmatprep.subr.bf16.mxu1 %v1290_v0 }
  0x58   :  { %962 = vmatprep.subr.bf16.mxu0 %v1290_v0 }
  0x5a   :  { %981 = vmatpush3.bf16.msra.mxu1 %v1079_v32 }
  0x5b   :  { %963 = vmatpush3.bf16.msra.mxu0 %v1071_v5  ;;  %982 = vmatprep.subr.bf16.mxu1 %v1290_v0 }
  0x5c   :  { %964 = vmatprep.subr.bf16.mxu0 %v1290_v0 }
  0x5e   :  { %983 = vmatpush3.bf16.msra.mxu1 %v1080_v33 }
  0x5f   :  { %965 = vmatpush3.bf16.msra.mxu0 %v1072_v6  ;;  %984 = vmatprep.subr.bf16.mxu1 %v1290_v0 }
  0x60   :  { %966 = vmatprep.subr.bf16.mxu0 %v1290_v0 }
  0x62   :  { %985 = vmatpush3.bf16.msra.mxu1 %v1081_v34 }
  0x63   :  { %967 = vmatpush3.bf16.msra.mxu0 %v1073_v7  ;;  %986 = vmatprep.subr.bf16.mxu1 %v1290_v0 }
  0x64   :  { %968 = vmatprep.subr.bf16.mxu0 %v1290_v0 }
  0x66   :  { %987 = vmatpush3.bf16.msra.mxu1 %v1082_v35 }
  0x67   :  { %969 = vmatpush3.bf16.msra.mxu0 %v1074_v8  ;;  %988 = vmatprep.subr.bf16.mxu1 %v1290_v0 }
  0x68   :  { %994 = vmatprep.subr.bf16.mxu0 %v1290_v0 }
  0x6a   :  { %971 = vmatmul.mubr.bf16.vlgmr.msra.gmra.mxu0 %v1075_v9  ;;  %989 = vmatpush3.bf16.msra.mxu1 %v1083_v36 }
  0x6b   :  { %1010 = vmatprep.mubr.msk.bf16.mxu0 %vm1291_vm0, %v1290_v0  ;;  %1014 = vmatprep.subr.bf16.mxu1 %v1290_v0 }
  0x6c   :  { %995 = vmatpush3.bf16.msra.mxu0 %v1084_v37 }
  0x6d   :  { %996 = vmatprep.subr.bf16.mxu0 %v1290_v0 }
  0x70   :  { %997 = vmatpush3.bf16.msra.mxu0 %v1085_v55 }
  0x71   :  { %998 = vmatprep.subr.bf16.mxu0 %v1290_v0 }
  0x74   :  { %999 = vmatpush3.bf16.msra.mxu0 %v1086_v56 }
  0x75   :  { %1000 = vmatprep.subr.bf16.mxu0 %v1290_v0 }
  0x78   :  { %1001 = vmatpush3.bf16.msra.mxu0 %v1087_v57 }
  0x79   :  { %1002 = vmatprep.subr.bf16.mxu0 %v1290_v0 }
  0x7c   :  { %1003 = vmatpush3.bf16.msra.mxu0 %v1088_v58 }
  0x7d   :  { %1004 = vmatprep.subr.bf16.mxu0 %v1290_v0 }
  0x80   :  { %1005 = vmatpush3.bf16.msra.mxu0 %v1089_v59 }
  0x81   :  { %1006 = vmatprep.subr.bf16.mxu0 %v1290_v0 }
  0x84   :  { %1007 = vmatpush3.bf16.msra.mxu0 %v1090_v60 }
  0x85   :  { %1008 = vmatprep.subr.bf16.mxu0 %v1290_v0 }
  0x88   :  { %1009 = vmatpush3.bf16.msra.mxu0 %v1091_v61 }
  0x89   :  { %1034 = vmatprep.subr.bf16.mxu0 %v1290_v0 }
 0x12a   :  { %v255_v11 = vpop.f32.mrf.mxu0 }
 0x12b   :  { %v1430_v12 = vadd.f32 %v859_v10, %v255_v11 }
 0x12c   :  { %v972_v13 = vpop.f32.mrf.mxu0 }
 0x12d   :  { %265 = vadd.xlane.f32.xlu0 %v1430_v12 }
 0x12e   :  { %v258_v14 = vpop.f32.mrf.mxu0 }
 0x12f   :  { %v1433_v15 = vadd.f32 %v859_v10, %v258_v14 }
 0x130   :  { %v973_v16 = vpop.f32.mrf.mxu0 }
 0x131   :  { %267 = vadd.xlane.f32.xlu0 %v1433_v15 }
 0x1b6   :  { %v266_v20 = vpop.xlane.xlu0 %265 }
 0x1b7   :  { %v269_v21 = vmul.f32 0.03125, %v266_v20  ;;  %v880_v20 = vld [vmem:[%s1530_s8] ss:$0 sm:$0xff] }
 0x1b9   :  { %v271_v22 = vsub.f32 %v1430_v12, %v269_v21 }
 0x1ba   :  { %v268_v23 = vpop.xlane.xlu0 %267 }
 0x1bb   :  { %v270_v24 = vmul.f32 0.03125, %v268_v23  ;;  %v273_v25 = vsel %vm264_vm1, %v271_v22, 0.0 }
 0x1bc   :  { %v275_v26 = vmul.f32 %v273_v25, %v273_v25 }
 0x1bd   :  { %v272_v27 = vsub.f32 %v1433_v15, %v270_v24 }
 0x1be   :  { %277 = vadd.xlane.f32.xlu1 %v275_v26 }
 0x1bf   :  { %v274_v28 = vsel %vm264_vm1, %v272_v27, 0.0 }
 0x1c0   :  { %v276_v29 = vmul.f32 %v274_v28, %v274_v28 }
 0x1c2   :  { %279 = vadd.xlane.f32.xlu1 %v276_v29 }
 0x247   :  { %v278_v38 = vpop.xlane.xlu1 %277 }
 0x248   :  { %v281_v39 = vmul.f32 0.03125, %v278_v38 }
 0x24a   :  { %v283_v40 = vadd.f32 1e-05, %v281_v39  ;;  %v1092_v39 = vld [vmem:[#allocation10 + $0x38] sm:$0xff]  }
 0x24b   :  { %v280_v41 = vpop.xlane.xlu1 %279 }
 0x24c   :  { %1108 = vrsqrt.f32 %v283_v40  ;;  %v282_v42 = vmul.f32 0.03125, %v280_v41 }
 0x24e   :  { %v284_v43 = vadd.f32 1e-05, %v282_v42 }
 0x250   :  { %1110 = vrsqrt.f32 %v284_v43 }
 0x259   :  { %v1109_v44 = vpop.eup %1108 }
 0x25a   :  { %v287_v45 = vmul.f32 %v1109_v44, %v273_v25 }
 0x25c   :  { %v295_v49 = vmul.f32 %v869_v46, %v287_v45 }
 0x25d   :  { %v1111_v47 = vpop.eup %1110 }
 0x25e   :  { %v288_v48 = vmul.f32 %v1111_v47, %v274_v28  ;;  %v303_v52 = vadd.f32 %v870_v50, %v295_v49  ;;  %v1094_v49 = vld [vmem:[#allocation10 + $0x28] sm:$0xff]  }
 0x260   :  { %v296_v51 = vmul.f32 %v869_v46, %v288_v48  ;;  %v1093_v48 = vld [vmem:[#allocation10 + $0x30] sm:$0xff]  }
 0x262   :  { %v304_v53 = vadd.f32 %v870_v50, %v296_v51  ;;  %v1095_v50 = vld [vmem:[#allocation10 + $0x20] sm:$0xff]   ;;  %v1096_v51 = vld [vmem:[#allocation10 + $0x18] sm:$0xff]  }
 0x264   :  { %v305_v54 = vpack.c.bf16 %v304_v53, %v303_v52  ;;  %v1097_v52 = vld [vmem:[#allocation10 + $0x10] sm:$0xff]   ;;  %v1099_v53 = vld [vmem:[#allocation10] sm:$0xff]  }
 0x266   :  { %991 = vmatmul.mubr.bf16.vlgmr.msra.gmra.mxu1 %v305_v54  ;;  %v1100_v54 = vld [vmem:[#allocation11 + $0x38] sm:$0xff]  }
 0x267   :  { %1030 = vmatprep.mubr.msk.bf16.mxu1 %vm1291_vm0, %v1290_v0  ;;  %1015 = vmatpush3.bf16.msra.mxu1 %v1092_v39 }
 0x268   :  { %1016 = vmatprep.subr.bf16.mxu1 %v1290_v0 }
 0x26b   :  { %1017 = vmatpush3.bf16.msra.mxu1 %v1093_v48 }
 0x26c   :  { %1018 = vmatprep.subr.bf16.mxu1 %v1290_v0 }
 0x26f   :  { %1019 = vmatpush3.bf16.msra.mxu1 %v1094_v49 }
 0x270   :  { %1020 = vmatprep.subr.bf16.mxu1 %v1290_v0 }
 0x273   :  { %1021 = vmatpush3.bf16.msra.mxu1 %v1095_v50 }
 0x274   :  { %1022 = vmatprep.subr.bf16.mxu1 %v1290_v0 }
 0x277   :  { %1023 = vmatpush3.bf16.msra.mxu1 %v1096_v51 }
 0x278   :  { %1024 = vmatprep.subr.bf16.mxu1 %v1290_v0 }
 0x27b   :  { %1025 = vmatpush3.bf16.msra.mxu1 %v1097_v52 }
 0x27c   :  { %1026 = vmatprep.subr.bf16.mxu1 %v1290_v0 }
 0x27f   :  { %1027 = vmatpush3.bf16.msra.mxu1 %v1098_v19 }
 0x280   :  { %1028 = vmatprep.subr.bf16.mxu1 %v1290_v0 }
 0x283   :  { %1029 = vmatpush3.bf16.msra.mxu1 %v1099_v53 }
 0x326   :  { %v410_v63 = vpop.f32.mrf.mxu1 }
 0x327   :  { %v411_v1 = vadd.f32 %v871_v62, %v410_v63  ;;  %v889_v63 = vld [vmem:[%s1531_s9] ss:$0 sm:$0xff] }
 0x328   :  { %v992_v2 = vpop.f32.mrf.mxu1 }
 0x329   :  { %v419_v3 = vmul.f32 0.70710677, %v411_v1  ;;  %v417_v11 = vmul.f32 0.5, %v411_v1 }
 0x32a   :  { %v413_v4 = vpop.f32.mrf.mxu1 }
 0x32b   :  { %1112 = verf.f32 %v419_v3  ;;  %v414_v5 = vadd.f32 %v871_v62, %v413_v4  ;;  %v890_v4 = vld [vmem:[%s1532_s10] ss:$0 sm:$0xff] }
 0x32c   :  { %v993_v6 = vpop.f32.mrf.mxu1 }
 0x32d   :  { %v420_v7 = vmul.f32 0.70710677, %v414_v5  ;;  %v418_v13 = vmul.f32 0.5, %v414_v5 }
 0x32f   :  { %1114 = verf.f32 %v420_v7 }
 0x338   :  { %v1113_v8 = vpop.eup %1112 }
 0x339   :  { %v423_v9 = vadd.f32 1.0, %v1113_v8 }
 0x33b   :  { %v425_v16 = vmul.f32 %v423_v9, %v417_v11  ;;  %v1101_v9 = vld [vmem:[#allocation11 + $0x30] sm:$0xff]   ;;  %v1103_v11 = vld [vmem:[#allocation11 + $0x20] sm:$0xff]  }
 0x33c   :  { %v1115_v10 = vpop.eup %1114 }
 0x33d   :  { %v424_v14 = vadd.f32 1.0, %v1115_v10  ;;  %v1102_v10 = vld [vmem:[#allocation11 + $0x28] sm:$0xff]  }
 0x33f   :  { %v426_v17 = vmul.f32 %v424_v14, %v418_v13  ;;  %v1104_v13 = vld [vmem:[#allocation11 + $0x18] sm:$0xff]   ;;  %v1105_v14 = vld [vmem:[#allocation11 + $0x10] sm:$0xff]  }
 0x341   :  { %v427_v18 = vpack.c.bf16 %v426_v17, %v425_v16  ;;  %v1106_v16 = vld [vmem:[#allocation11 + $0x8] sm:$0xff]   ;;  %v1107_v17 = vld [vmem:[#allocation11] sm:$0xff]  }
 0x343   :  { %1011 = vmatmul.mubr.bf16.vlgmr.msra.gmra.mxu0 %v427_v18  ;;  %v891_v18 = vld [vmem:[%s1534_s12] ss:$0 sm:$0xff] }
 0x344   :  { %1050 = vmatprep.mubr.msk.bf16.mxu0 %vm1291_vm0, %v1290_v0  ;;  %1035 = vmatpush3.bf16.msra.mxu0 %v1100_v54 }
 0x345   :  { %1036 = vmatprep.subr.bf16.mxu0 %v1290_v0 }
 0x348   :  { %1037 = vmatpush3.bf16.msra.mxu0 %v1101_v9 }
 0x349   :  { %1038 = vmatprep.subr.bf16.mxu0 %v1290_v0 }
 0x34c   :  { %1039 = vmatpush3.bf16.msra.mxu0 %v1102_v10 }
 0x34d   :  { %1040 = vmatprep.subr.bf16.mxu0 %v1290_v0 }
 0x350   :  { %1041 = vmatpush3.bf16.msra.mxu0 %v1103_v11 }
 0x351   :  { %1042 = vmatprep.subr.bf16.mxu0 %v1290_v0 }
 0x354   :  { %1043 = vmatpush3.bf16.msra.mxu0 %v1104_v13 }
 0x355   :  { %1044 = vmatprep.subr.bf16.mxu0 %v1290_v0 }
 0x358   :  { %1045 = vmatpush3.bf16.msra.mxu0 %v1105_v14 }
 0x359   :  { %1046 = vmatprep.subr.bf16.mxu0 %v1290_v0 }
 0x35c   :  { %1047 = vmatpush3.bf16.msra.mxu0 %v1106_v16 }
 0x35d   :  { %1048 = vmatprep.subr.bf16.mxu0 %v1290_v0 }
 0x360   :  { %1049 = vmatpush3.bf16.msra.mxu0 %v1107_v17 }
 0x403   :  { %v532_v21 = vpop.f32.mrf.mxu0 }
 0x404   :  { %v533_v22 = vadd.f32 %v880_v20, %v532_v21 }
 0x405   :  { %v1012_v23 = vpop.f32.mrf.mxu0 }
 0x406   :  { %v541_v24 = vmul.f32 0.70710677, %v533_v22  ;;  %v539_v30 = vmul.f32 0.5, %v533_v22 }
 0x407   :  { %v535_v25 = vpop.f32.mrf.mxu0 }
 0x408   :  { %1116 = verf.f32 %v541_v24  ;;  %v536_v26 = vadd.f32 %v880_v20, %v535_v25 }
 0x409   :  { %v1013_v27 = vpop.f32.mrf.mxu0 }
 0x40a   :  { %v542_v28 = vmul.f32 0.70710677, %v536_v26  ;;  %v540_v34 = vmul.f32 0.5, %v536_v26 }
 0x40c   :  { %1118 = verf.f32 %v542_v28 }
 0x415   :  { %v1117_v29 = vpop.eup %1116 }
 0x416   :  { %v545_v31 = vadd.f32 1.0, %v1117_v29 }
 0x418   :  { %v547_v32 = vmul.f32 %v545_v31, %v539_v30 }
 0x419   :  { %v1119_v33 = vpop.eup %1118 }
 0x41a   :  { %v546_v35 = vadd.f32 1.0, %v1119_v33  ;;  %v1478_v36 = vadd.f32 %v547_v32, %v1430_v12 }
 0x41c   :  { %v548_v37 = vmul.f32 %v546_v35, %v540_v34  ;;  %551 = vadd.xlane.f32.xlu0 %v1478_v36 }
 0x41e   :  { %v1482_v38 = vadd.f32 %v548_v37, %v1433_v15  ;;  %v900_v37 = vld [vmem:[%s1536_s14] ss:$0 sm:$0xff]  ;;  %s1292_s14 = smov [#allocation13]  }
 0x41f   :  { %s844_s22 = sshll.u32 %s1292_s14, 4  ;;  %s845_s22 = int_to_ptr.vmem [resolvable:$true] %s844_s22 }
 0x420   :  { %553 = vadd.xlane.f32.xlu1 %v1482_v38  ;;  %s1252_s25 = scalar_lea.vmem %s845_s22, 256  ;;  %p1257_p3 = scmp.lt.s32.totalorder %s845_s22, %s845_s22 }
 0x421   :  { %p1253_p2 = scmp.ne.s32.totalorder %s845_s22, %s1252_s25  ;;  %p1258_p4 = scmp.lt.s32.totalorder %s1252_s25, %s1252_s25 }
 0x423   :  { %p1259_p5 = por %p1258_p4, %p1257_p3 }
 0x425   :  { %p1260_p6 = pnand %p1259_p5, %p1253_p2 }
 0x4a5   :  { %v552_v40 = vpop.xlane.xlu0 %551 }
 0x4a6   :  { %v555_v41 = vmul.f32 0.03125, %v552_v40 }
 0x4a8   :  { %v557_v42 = vsub.f32 %v1478_v36, %v555_v41 }
 0x4a9   :  { %v554_v43 = vpop.xlane.xlu1 %553 }
 0x4aa   :  { %v556_v44 = vmul.f32 0.03125, %v554_v43  ;;  %v559_v12 = vsel %vm264_vm1, %v557_v42, 0.0 }
 0x4ab   :  { %v561_v45 = vmul.f32 %v559_v12, %v559_v12 }
 0x4ac   :  { %v558_v46 = vsub.f32 %v1482_v38, %v556_v44 }
 0x4ad   :  { %563 = vadd.xlane.f32.xlu0 %v561_v45 }
 0x4ae   :  { %v560_v15 = vsel %vm264_vm1, %v558_v46, 0.0 }
 0x4af   :  { %v562_v47 = vmul.f32 %v560_v15, %v560_v15 }
 0x4b1   :  { %565 = vadd.xlane.f32.xlu1 %v562_v47 }
 0x536   :  { %v564_v55 = vpop.xlane.xlu0 %563 }
 0x537   :  { %v567_v56 = vmul.f32 0.03125, %v564_v55 }
 0x539   :  { %v569_v57 = vadd.f32 1e-05, %v567_v56 }
 0x53a   :  { %v566_v58 = vpop.xlane.xlu1 %565 }
 0x53b   :  { %1120 = vrsqrt.f32 %v569_v57  ;;  %v568_v59 = vmul.f32 0.03125, %v566_v58 }
 0x53d   :  { %v570_v60 = vadd.f32 1e-05, %v568_v59 }
 0x53f   :  { %1122 = vrsqrt.f32 %v570_v60 }
 0x548   :  { %v1121_v61 = vpop.eup %1120 }
 0x549   :  { %v573_v62 = vmul.f32 %v1121_v61, %v559_v12 }
 0x54b   :  { %v581_v3 = vmul.f32 %v889_v63, %v573_v62 }
 0x54c   :  { %v1123_v1 = vpop.eup %1122 }
 0x54d   :  { %v574_v2 = vmul.f32 %v1123_v1, %v560_v15  ;;  %v589_v6 = vadd.f32 %v890_v4, %v581_v3 }
 0x54f   :  { %v582_v5 = vmul.f32 %v889_v63, %v574_v2 }
 0x551   :  { %v590_v7 = vadd.f32 %v890_v4, %v582_v5 }
 0x553   :  { %v591_v8 = vpack.c.bf16 %v590_v7, %v589_v6 }
 0x555   :  { %1031 = vmatmul.mubr.bf16.vlgmr.msra.gmra.mxu1 %v591_v8 }
 0x615   :  { %v696_v20 = vpop.f32.mrf.mxu1 }
 0x616   :  { %v697_v21 = vadd.f32 %v891_v18, %v696_v20 }
 0x617   :  { %v1032_v22 = vpop.f32.mrf.mxu1 }
 0x618   :  { %v705_v23 = vmul.f32 0.70710677, %v697_v21  ;;  %v703_v0 = vmul.f32 0.5, %v697_v21 }
 0x619   :  { %v699_v24 = vpop.f32.mrf.mxu1 }
 0x61a   :  { %1124 = verf.f32 %v705_v23  ;;  %v700_v25 = vadd.f32 %v891_v18, %v699_v24 }
 0x61b   :  { %v1033_v26 = vpop.f32.mrf.mxu1 }
 0x61c   :  { %v706_v27 = vmul.f32 0.70710677, %v700_v25  ;;  %v704_v31 = vmul.f32 0.5, %v700_v25 }
 0x61e   :  { %1126 = verf.f32 %v706_v27 }
 0x627   :  { %v1125_v28 = vpop.eup %1124 }
 0x628   :  { %v709_v29 = vadd.f32 1.0, %v1125_v28 }
 0x62a   :  { %v711_v33 = vmul.f32 %v709_v29, %v703_v0 }
 0x62b   :  { %v1127_v30 = vpop.eup %1126 }
 0x62c   :  { %v710_v32 = vadd.f32 1.0, %v1127_v30 }
 0x62e   :  { %v712_v34 = vmul.f32 %v710_v32, %v704_v31 }
 0x630   :  { %v713_v35 = vpack.c.bf16 %v712_v34, %v711_v33 }
 0x632   :  { %1051 = vmatmul.mubr.bf16.vlgmr.msra.gmra.mxu0 %v713_v35 }
 0x6f2   :  { %v818_v39 = vpop.f32.mrf.mxu0 }
 0x6f3   :  { %v819_v40 = vadd.f32 %v900_v37, %v818_v39 }
 0x6f4   :  { %v1052_v41 = vpop.f32.mrf.mxu0 }
 0x6f5   :  { %v827_v42 = vmul.f32 0.70710677, %v819_v40  ;;  %v825_v15 = vmul.f32 0.5, %v819_v40 }
 0x6f6   :  { %v821_v43 = vpop.f32.mrf.mxu0 }
 0x6f7   :  { %1128 = verf.f32 %v827_v42  ;;  %v822_v44 = vadd.f32 %v900_v37, %v821_v43 }
 0x6f8   :  { %v1053_v12 = vpop.f32.mrf.mxu0 }
 0x6f9   :  { %v828_v45 = vmul.f32 0.70710677, %v822_v44  ;;  %v826_v51 = vmul.f32 0.5, %v822_v44 }
 0x6fb   :  { %1130 = verf.f32 %v828_v45 }
 0x704   :  { %v1129_v46 = vpop.eup %1128 }
 0x705   :  { %v831_v47 = vadd.f32 1.0, %v1129_v46 }
 0x707   :  { %v833_v48 = vmul.f32 %v831_v47, %v825_v15 }
 0x708   :  { %v1131_v49 = vpop.eup %1130 }
 0x709   :  { %v835_v50 = vadd.f32 %v833_v48, %v1478_v36  ;;  %v832_v52 = vadd.f32 1.0, %v1131_v49 }
 0x70b   :  { %837 = vst [vmem:[#allocation13] sm:$0xff] %v835_v50  ;;  %v834_v19 = vmul.f32 %v832_v52, %v826_v51 }
 0x70d   :  { %v836_v53 = vadd.f32 %v834_v19, %v1482_v38 }
 0x70f   :  { %838 = vst [vmem:[#allocation13 + $0x8] sm:$0xff] %v836_v53 }
 0x710   :  { %1263 = shalt.err (!%p1260_p6)
}
 0x711   :  { %s1293_s26 = smov 128   ;;  %s1294_s27 = smov 8  }
 0x712   :  { %850 = dma.vmem_to_hbm [thread:$0]  %s845_s22, 256, %s1537_s15, [#allocation4], %s1293_s26, %s1293_s26, %s1294_s27  }
 0x713   :  { %1280 = dma.done.wait [#allocation4], 256  }
 0x714   :  { %1281 = vsyncadd [#allocation4], 4294967040 }
 0x715   :  { %854 = vsyncpa [#allocation3], 1 }
 0x716   :  { %855 = vsyncpa [#allocation6], 1 }
 0x717   :  { %856 = vsyncpa [#allocation9], 1 }
 0x718   :  { %857 = vsyncpa [#allocation12], 1 }
 0x719   :  { %858 = vsyncpa [#allocation4], 1 }

// kernel: tpu_custom_call.1
= control target key start
LH: loop header
LB: loop body
LE: loop exit
PB: predicated region body
PF: predicated region fallthrough
CT: control target
= control target key end

     0   :  { %20 = vsyncpa [#allocation3], 0  ;;  %s1522_s0 = inlined_call_operand.hbm [shape: bf16[16,128], index: 0, kind: input, shape index: {}]   ;;  %s1523_s1 = inlined_call_operand.hbm [shape: bf16[128,128], index: 1, kind: input, shape index: {}]   ;;  %s1524_s2 = inlined_call_operand.vmem [shape: f32[1,128], index: 2, kind: input, shape index: {}]   ;;  %s1525_s3 = inlined_call_operand.vmem [shape: f32[1,128], index: 3, kind: input, shape index: {}]   ;;  %s1526_s4 = inlined_call_operand.vmem [shape: f32[1,128], index: 4, kind: input, shape index: {}]   ;;  %s1527_s5 = inlined_call_operand.hbm [shape: bf16[128,128], index: 5, kind: input, shape index: {}]   ;;  %s1528_s6 = inlined_call_operand.vmem [shape: f32[1,128], index: 6, kind: input, shape index: {}]   ;;  %s1529_s7 = inlined_call_operand.hbm [shape: bf16[128,128], index: 7, kind: input, shape index: {}]   ;;  %s1530_s8 = inlined_call_operand.vmem [shape: f32[1,128], index: 8, kind: input, shape index: {}]   ;;  %s1531_s9 = inlined_call_operand.vmem [shape: f32[1,128], index: 9, kind: input, shape index: {}]   ;;  %s1532_s10 = inlined_call_operand.vmem [shape: f32[1,128], index: 10, kind: input, shape index: {}]   ;;  %s1533_s11 = inlined_call_operand.hbm [shape: bf16[128,128], index: 11, kind: input, shape index: {}]   ;;  %s1534_s12 = inlined_call_operand.vmem [shape: f32[1,128], index: 12, kind: input, shape index: {}]   ;;  %s1535_s13 = inlined_call_operand.hbm [shape: bf16[128,128], index: 13, kind: input, shape index: {}]   ;;  %s1536_s14 = inlined_call_operand.vmem [shape: f32[1,128], index: 14, kind: input, shape index: {}]   ;;  %s1537_s15 = inlined_call_operand.hbm [shape: f32[16,128], index: 15, kind: output, shape index: {}]  }
   0x1   :  { %21 = vsyncpa [#allocation6], 0 }
   0x2   :  { %22 = vsyncpa [#allocation9], 0 }
   0x3   :  { %23 = vsyncpa [#allocation12], 0 }
   0x4   :  { %24 = vsyncpa [#allocation4], 0  ;;  %s1282_s18 = smov [#allocation5]   ;;  %s1283_s20 = smov [#allocation8]  }
   0x5   :  { %s42_s19 = sshll.u32 %s1282_s18, 4  ;;  %s74_s21 = sshll.u32 %s1283_s20, 4  ;;  %s43_s19 = int_to_ptr.vmem [resolvable:$true] %s42_s19  ;;  %s75_s21 = int_to_ptr.vmem [resolvable:$true] %s74_s21 }
   0x6   :  { %s1140_s22 = scalar_lea.vmem %s43_s19, 1024  ;;  %p1145_p1 = scmp.lt.s32.totalorder %s43_s19, %s43_s19 }
   0x7   :  { %p1141_p0 = scmp.ne.s32.totalorder %s43_s19, %s1140_s22  ;;  %p1146_p2 = scmp.lt.s32.totalorder %s1140_s22, %s1140_s22 }
   0x9   :  { %p1147_p3 = por %p1146_p2, %p1145_p1 }
   0xb   :  { %p1148_p4 = pnand %p1147_p3, %p1141_p0 }
   0xd   :  { %1151 = shalt.err (!%p1148_p4)
}
   0xe   :  { %s1284_s23 = smov 64   ;;  %s1285_s24 = smov 4  }
   0xf   :  { %48 = dma.hbm_to_vmem [thread:$0]  %s1523_s1, 1024, %s43_s19, [#allocation6], %s1284_s23, %s1284_s23, %s1285_s24  }
  0x10   :  { %s1160_s27 = scalar_lea.vmem %s75_s21, 1024  ;;  %p1165_p6 = scmp.lt.s32.totalorder %s75_s21, %s75_s21 }
  0x11   :  { %p1161_p5 = scmp.ne.s32.totalorder %s75_s21, %s1160_s27  ;;  %p1166_p7 = scmp.lt.s32.totalorder %s1160_s27, %s1160_s27 }
  0x13   :  { %p1167_p8 = por %p1166_p7, %p1165_p6 }
  0x15   :  { %p1168_p9 = pnand %p1167_p8, %p1161_p5 }
  0x17   :  { %1171 = shalt.err (!%p1168_p9)
}
  0x18   :  { %80 = dma.hbm_to_vmem [thread:$0]  %s1529_s7, 1024, %s75_s21, [#allocation9], %s1284_s23, %s1284_s23, %s1285_s24  }
  0x19   :  { %s1286_s30 = smov [#allocation2]   ;;  %s1287_s17 = smov [#allocation7]  }
  0x1a   :  { %s30_s16 = sshll.u32 %s1286_s30, 4  ;;  %s60_s18 = sshll.u32 %s1287_s17, 4  ;;  %s31_s16 = int_to_ptr.vmem [resolvable:$true] %s30_s16  ;;  %s61_s18 = int_to_ptr.vmem [resolvable:$true] %s60_s18 }
  0x1b   :  { %s1180_s1 = scalar_lea.vmem %s31_s16, 128  ;;  %p1185_p11 = scmp.lt.s32.totalorder %s31_s16, %s31_s16 }
  0x1c   :  { %p1181_p10 = scmp.ne.s32.totalorder %s31_s16, %s1180_s1  ;;  %p1186_p12 = scmp.lt.s32.totalorder %s1180_s1, %s1180_s1 }
  0x1e   :  { %p1187_p13 = por %p1186_p12, %p1185_p11 }
  0x20   :  { %p1188_p0 = pnand %p1187_p13, %p1181_p10 }
  0x22   :  { %1191 = shalt.err (!%p1188_p0)
}
  0x23   :  { %36 = dma.hbm_to_vmem [thread:$0]  %s1522_s0, 128, %s31_s16, [#allocation3], %s1284_s23, %s1284_s23, %s1285_s24  }
  0x24   :  { %s1200_s7 = scalar_lea.vmem %s61_s18, 1024  ;;  %p1205_p2 = scmp.lt.s32.totalorder %s61_s18, %s61_s18 }
  0x25   :  { %p1201_p1 = scmp.ne.s32.totalorder %s61_s18, %s1200_s7  ;;  %p1206_p3 = scmp.lt.s32.totalorder %s1200_s7, %s1200_s7 }
  0x27   :  { %p1207_p4 = por %p1206_p3, %p1205_p2 }
  0x29   :  { %p1208_p5 = pnand %p1207_p4, %p1201_p1 }
  0x2b   :  { %1211 = shalt.err (!%p1208_p5)
}
  0x2c   :  { %66 = dma.hbm_to_vmem [thread:$0]  %s1527_s5, 1024, %s61_s18, [#allocation6], %s1284_s23, %s1284_s23, %s1285_s24  }
  0x2d   :  { %s1288_s25 = smov [#allocation10]   ;;  %s1289_s27 = smov [#allocation11]  }
  0x2e   :  { %s92_s26 = sshll.u32 %s1288_s25, 4  ;;  %s106_s28 = sshll.u32 %s1289_s27, 4  ;;  %s93_s26 = int_to_ptr.vmem [resolvable:$true] %s92_s26  ;;  %s107_s28 = int_to_ptr.vmem [resolvable:$true] %s106_s28 }
  0x2f   :  { %s1220_s0 = scalar_lea.vmem %s93_s26, 1024  ;;  %p1225_p7 = scmp.lt.s32.totalorder %s93_s26, %s93_s26 }
  0x30   :  { %p1221_p6 = scmp.ne.s32.totalorder %s93_s26, %s1220_s0  ;;  %p1226_p8 = scmp.lt.s32.totalorder %s1220_s0, %s1220_s0 }
  0x32   :  { %p1227_p9 = por %p1226_p8, %p1225_p7 }
  0x34   :  { %p1228_p10 = pnand %p1227_p9, %p1221_p6 }
  0x36   :  { %1231 = shalt.err (!%p1228_p10)
}
  0x37   :  { %98 = dma.hbm_to_vmem [thread:$0]  %s1533_s11, 1024, %s93_s26, [#allocation9], %s1284_s23, %s1284_s23, %s1285_s24  }
  0x38   :  { %s1240_s5 = scalar_lea.vmem %s107_s28, 1024  ;;  %p1245_p12 = scmp.lt.s32.totalorder %s107_s28, %s107_s28 }
  0x39   :  { %p1241_p11 = scmp.ne.s32.totalorder %s107_s28, %s1240_s5  ;;  %p1246_p13 = scmp.lt.s32.totalorder %s1240_s5, %s1240_s5 }
  0x3b   :  { %p1247_p0 = por %p1246_p13, %p1245_p12 }
  0x3d   :  { %p1248_p1 = pnand %p1247_p0, %p1241_p11 }
  0x3f   :  { %1251 = shalt.err (!%p1248_p1)
}
  0x40   :  { %112 = dma.hbm_to_vmem [thread:$0]  %s1535_s13, 1024, %s107_s28, [#allocation12], %s1284_s23, %s1284_s23, %s1285_s24  }
  0x41   :  { %1272 = dma.done.wait [#allocation3], 128  }
  0x42   :  { %1273 = vsyncadd [#allocation3], 4294967168 }
  0x43   :  { %1274 = dma.done.wait [#allocation6], 2048  }
  0x44   :  { %1275 = vsyncadd [#allocation6], 4294965248 }
  0x45   :  { %1276 = dma.done.wait [#allocation9], 2048  }
  0x46   :  { %1277 = vsyncadd [#allocation9], 4294965248 }
  0x47   :  { %1278 = dma.done.wait [#allocation12], 1024  }
  0x48   :  { %1279 = vsyncadd [#allocation12], 4294966272  ;;  %v1290_v0 = vmov 0.0   ;;  %vm1291_vm0 = vmmov 0   ;;  %v1067_v1 = vld [vmem:[#allocation5 + $0x38] sm:$0xff]   ;;  %v1068_v2 = vld [vmem:[#allocation5 + $0x30] sm:$0xff]   ;;  %v262_v18 = vlaneseq }
  0x49   :  { %954 = vmatprep.subr.bf16.mxu0 %v1290_v0  ;;  %970 = vmatprep.mubr.msk.bf16.mxu0 %vm1291_vm0, %v1290_v0  ;;  %v1069_v3 = vld [vmem:[#allocation5 + $0x28] sm:$0xff]   ;;  %v1070_v4 = vld [vmem:[#allocation5 + $0x20] sm:$0xff]   ;;  %v1071_v5 = vld [vmem:[#allocation5 + $0x18] sm:$0xff]  }
  0x4a   :  { %974 = vmatprep.subr.bf16.mxu1 %v1290_v0  ;;  %990 = vmatprep.mubr.msk.bf16.mxu1 %vm1291_vm0, %v1290_v0  ;;  %v1072_v6 = vld [vmem:[#allocation5 + $0x10] sm:$0xff]   ;;  %v1073_v7 = vld [vmem:[#allocation5 + $0x8] sm:$0xff]   ;;  %v1074_v8 = vld [vmem:[#allocation5] sm:$0xff]   ;;  %v1437_v19 = vand.u32 127, %v262_v18 }
  0x4b   :  { %955 = vmatpush3.bf16.msra.mxu0 %v1067_v1  ;;  %v1075_v9 = vld [vmem:[#allocation2] sm:$0xff]   ;;  %v1077_v30 = vld [vmem:[#allocation7 + $0x30] sm:$0xff]   ;;  %v1078_v31 = vld [vmem:[#allocation7 + $0x28] sm:$0xff]  }
  0x4c   :  { %956 = vmatprep.subr.bf16.mxu0 %v1290_v0  ;;  %v859_v10 = vld [vmem:[%s1524_s2] ss:$0 sm:$0xff]  ;;  %vm264_vm1 = vcmp.lt.s32.totalorder %v1437_v19, 32  ;;  %v1079_v32 = vld [vmem:[#allocation7 + $0x20] sm:$0xff]   ;;  %v1081_v34 = vld [vmem:[#allocation7 + $0x10] sm:$0xff]  }
  0x4d   :  { %v1076_v17 = vld [vmem:[#allocation7 + $0x38] sm:$0xff]   ;;  %v1082_v35 = vld [vmem:[#allocation7 + $0x8] sm:$0xff]   ;;  %v1083_v36 = vld [vmem:[#allocation7] sm:$0xff]  }
  0x4e   :  { %975 = vmatpush3.bf16.msra.mxu1 %v1076_v17  ;;  %v1080_v33 = vld [vmem:[#allocation7 + $0x18] sm:$0xff]   ;;  %v1085_v55 = vld [vmem:[#allocation8 + $0x30] sm:$0xff]   ;;  %v1086_v56 = vld [vmem:[#allocation8 + $0x28] sm:$0xff]  }
  0x4f   :  { %957 = vmatpush3.bf16.msra.mxu0 %v1068_v2  ;;  %976 = vmatprep.subr.bf16.mxu1 %v1290_v0  ;;  %v1084_v37 = vld [vmem:[#allocation8 + $0x38] sm:$0xff]   ;;  %v1087_v57 = vld [vmem:[#allocation8 + $0x20] sm:$0xff]   ;;  %v1089_v59 = vld [vmem:[#allocation8 + $0x10] sm:$0xff]  }
  0x50   :  { %958 = vmatprep.subr.bf16.mxu0 %v1290_v0  ;;  %v869_v46 = vld [vmem:[%s1525_s3] ss:$0 sm:$0xff]  ;;  %v1090_v60 = vld [vmem:[#allocation8 + $0x8] sm:$0xff]   ;;  %v1091_v61 = vld [vmem:[#allocation8] sm:$0xff]  }
  0x51   :  { %v870_v50 = vld [vmem:[%s1526_s4] ss:$0 sm:$0xff]  ;;  %v1098_v19 = vld [vmem:[#allocation10 + $0x8] sm:$0xff]  }
  0x52   :  { %977 = vmatpush3.bf16.msra.mxu1 %v1077_v30  ;;  %v1088_v58 = vld [vmem:[#allocation8 + $0x18] sm:$0xff]  }
  0x53   :  { %959 = vmatpush3.bf16.msra.mxu0 %v1069_v3  ;;  %978 = vmatprep.subr.bf16.mxu1 %v1290_v0  ;;  %v871_v62 = vld [vmem:[%s1528_s6] ss:$0 sm:$0xff] }
  0x54   :  { %960 = vmatprep.subr.bf16.mxu0 %v1290_v0 }
  0x56   :  { %979 = vmatpush3.bf16.msra.mxu1 %v1078_v31 }
  0x57   :  { %961 = vmatpush3.bf16.msra.mxu0 %v1070_v4  ;;  %980 = vmatprep.subr.bf16.mxu1 %v1290_v0 }
  0x58   :  { %962 = vmatprep.subr.bf16.mxu0 %v1290_v0 }
  0x5a   :  { %981 = vmatpush3.bf16.msra.mxu1 %v1079_v32 }
  0x5b   :  { %963 = vmatpush3.bf16.msra.mxu0 %v1071_v5  ;;  %982 = vmatprep.subr.bf16.mxu1 %v1290_v0 }
  0x5c   :  { %964 = vmatprep.subr.bf16.mxu0 %v1290_v0 }
  0x5e   :  { %983 = vmatpush3.bf16.msra.mxu1 %v1080_v33 }
  0x5f   :  { %965 = vmatpush3.bf16.msra.mxu0 %v1072_v6  ;;  %984 = vmatprep.subr.bf16.mxu1 %v1290_v0 }
  0x60   :  { %966 = vmatprep.subr.bf16.mxu0 %v1290_v0 }
  0x62   :  { %985 = vmatpush3.bf16.msra.mxu1 %v1081_v34 }
  0x63   :  { %967 = vmatpush3.bf16.msra.mxu0 %v1073_v7  ;;  %986 = vmatprep.subr.bf16.mxu1 %v1290_v0 }
  0x64   :  { %968 = vmatprep.subr.bf16.mxu0 %v1290_v0 }
  0x66   :  { %987 = vmatpush3.bf16.msra.mxu1 %v1082_v35 }
  0x67   :  { %969 = vmatpush3.bf16.msra.mxu0 %v1074_v8  ;;  %988 = vmatprep.subr.bf16.mxu1 %v1290_v0 }
  0x68   :  { %994 = vmatprep.subr.bf16.mxu0 %v1290_v0 }
  0x6a   :  { %971 = vmatmul.mubr.bf16.vlgmr.msra.gmra.mxu0 %v1075_v9  ;;  %989 = vmatpush3.bf16.msra.mxu1 %v1083_v36 }
  0x6b   :  { %1010 = vmatprep.mubr.msk.bf16.mxu0 %vm1291_vm0, %v1290_v0  ;;  %1014 = vmatprep.subr.bf16.mxu1 %v1290_v0 }
  0x6c   :  { %995 = vmatpush3.bf16.msra.mxu0 %v1084_v37 }
  0x6d   :  { %996 = vmatprep.subr.bf16.mxu0 %v1290_v0 }
  0x70   :  { %997 = vmatpush3.bf16.msra.mxu0 %v1085_v55 }
  0x71   :  { %998 = vmatprep.subr.bf16.mxu0 %v1290_v0 }
  0x74   :  { %999 = vmatpush3.bf16.msra.mxu0 %v1086_v56 }
  0x75   :  { %1000 = vmatprep.subr.bf16.mxu0 %v1290_v0 }
  0x78   :  { %1001 = vmatpush3.bf16.msra.mxu0 %v1087_v57 }
  0x79   :  { %1002 = vmatprep.subr.bf16.mxu0 %v1290_v0 }
  0x7c   :  { %1003 = vmatpush3.bf16.msra.mxu0 %v1088_v58 }
  0x7d   :  { %1004 = vmatprep.subr.bf16.mxu0 %v1290_v0 }
  0x80   :  { %1005 = vmatpush3.bf16.msra.mxu0 %v1089_v59 }
  0x81   :  { %1006 = vmatprep.subr.bf16.mxu0 %v1290_v0 }
  0x84   :  { %1007 = vmatpush3.bf16.msra.mxu0 %v1090_v60 }
  0x85   :  { %1008 = vmatprep.subr.bf16.mxu0 %v1290_v0 }
  0x88   :  { %1009 = vmatpush3.bf16.msra.mxu0 %v1091_v61 }
  0x89   :  { %1034 = vmatprep.subr.bf16.mxu0 %v1290_v0 }
 0x12a   :  { %v255_v11 = vpop.f32.mrf.mxu0 }
 0x12b   :  { %v1430_v12 = vadd.f32 %v859_v10, %v255_v11 }
 0x12c   :  { %v972_v13 = vpop.f32.mrf.mxu0 }
 0x12d   :  { %265 = vadd.xlane.f32.xlu0 %v1430_v12 }
 0x12e   :  { %v258_v14 = vpop.f32.mrf.mxu0 }
 0x12f   :  { %v1433_v15 = vadd.f32 %v859_v10, %v258_v14 }
 0x130   :  { %v973_v16 = vpop.f32.mrf.mxu0 }
 0x131   :  { %267 = vadd.xlane.f32.xlu0 %v1433_v15 }
 0x1b6   :  { %v266_v20 = vpop.xlane.xlu0 %265 }
 0x1b7   :  { %v269_v21 = vmul.f32 0.03125, %v266_v20  ;;  %v880_v20 = vld [vmem:[%s1530_s8] ss:$0 sm:$0xff] }
 0x1b9   :  { %v271_v22 = vsub.f32 %v1430_v12, %v269_v21 }
 0x1ba   :  { %v268_v23 = vpop.xlane.xlu0 %267 }
 0x1bb   :  { %v270_v24 = vmul.f32 0.03125, %v268_v23  ;;  %v273_v25 = vsel %vm264_vm1, %v271_v22, 0.0 }
 0x1bc   :  { %v275_v26 = vmul.f32 %v273_v25, %v273_v25 }
 0x1bd   :  { %v272_v27 = vsub.f32 %v1433_v15, %v270_v24 }
 0x1be   :  { %277 = vadd.xlane.f32.xlu1 %v275_v26 }
 0x1bf   :  { %v274_v28 = vsel %vm264_vm1, %v272_v27, 0.0 }
 0x1c0   :  { %v276_v29 = vmul.f32 %v274_v28, %v274_v28 }
 0x1c2   :  { %279 = vadd.xlane.f32.xlu1 %v276_v29 }
 0x247   :  { %v278_v38 = vpop.xlane.xlu1 %277 }
 0x248   :  { %v281_v39 = vmul.f32 0.03125, %v278_v38 }
 0x24a   :  { %v283_v40 = vadd.f32 1e-05, %v281_v39  ;;  %v1092_v39 = vld [vmem:[#allocation10 + $0x38] sm:$0xff]  }
 0x24b   :  { %v280_v41 = vpop.xlane.xlu1 %279 }
 0x24c   :  { %1108 = vrsqrt.f32 %v283_v40  ;;  %v282_v42 = vmul.f32 0.03125, %v280_v41 }
 0x24e   :  { %v284_v43 = vadd.f32 1e-05, %v282_v42 }
 0x250   :  { %1110 = vrsqrt.f32 %v284_v43 }
 0x259   :  { %v1109_v44 = vpop.eup %1108 }
 0x25a   :  { %v287_v45 = vmul.f32 %v1109_v44, %v273_v25 }
 0x25c   :  { %v295_v49 = vmul.f32 %v869_v46, %v287_v45 }
 0x25d   :  { %v1111_v47 = vpop.eup %1110 }
 0x25e   :  { %v288_v48 = vmul.f32 %v1111_v47, %v274_v28  ;;  %v303_v52 = vadd.f32 %v870_v50, %v295_v49  ;;  %v1094_v49 = vld [vmem:[#allocation10 + $0x28] sm:$0xff]  }
 0x260   :  { %v296_v51 = vmul.f32 %v869_v46, %v288_v48  ;;  %v1093_v48 = vld [vmem:[#allocation10 + $0x30] sm:$0xff]  }
 0x262   :  { %v304_v53 = vadd.f32 %v870_v50, %v296_v51  ;;  %v1095_v50 = vld [vmem:[#allocation10 + $0x20] sm:$0xff]   ;;  %v1096_v51 = vld [vmem:[#allocation10 + $0x18] sm:$0xff]  }
 0x264   :  { %v305_v54 = vpack.c.bf16 %v304_v53, %v303_v52  ;;  %v1097_v52 = vld [vmem:[#allocation10 + $0x10] sm:$0xff]   ;;  %v1099_v53 = vld [vmem:[#allocation10] sm:$0xff]  }
 0x266   :  { %991 = vmatmul.mubr.bf16.vlgmr.msra.gmra.mxu1 %v305_v54  ;;  %v1100_v54 = vld [vmem:[#allocation11 + $0x38] sm:$0xff]  }
 0x267   :  { %1030 = vmatprep.mubr.msk.bf16.mxu1 %vm1291_vm0, %v1290_v0  ;;  %1015 = vmatpush3.bf16.msra.mxu1 %v1092_v39 }
 0x268   :  { %1016 = vmatprep.subr.bf16.mxu1 %v1290_v0 }
 0x26b   :  { %1017 = vmatpush3.bf16.msra.mxu1 %v1093_v48 }
 0x26c   :  { %1018 = vmatprep.subr.bf16.mxu1 %v1290_v0 }
 0x26f   :  { %1019 = vmatpush3.bf16.msra.mxu1 %v1094_v49 }
 0x270   :  { %1020 = vmatprep.subr.bf16.mxu1 %v1290_v0 }
 0x273   :  { %1021 = vmatpush3.bf16.msra.mxu1 %v1095_v50 }
 0x274   :  { %1022 = vmatprep.subr.bf16.mxu1 %v1290_v0 }
 0x277   :  { %1023 = vmatpush3.bf16.msra.mxu1 %v1096_v51 }
 0x278   :  { %1024 = vmatprep.subr.bf16.mxu1 %v1290_v0 }
 0x27b   :  { %1025 = vmatpush3.bf16.msra.mxu1 %v1097_v52 }
 0x27c   :  { %1026 = vmatprep.subr.bf16.mxu1 %v1290_v0 }
 0x27f   :  { %1027 = vmatpush3.bf16.msra.mxu1 %v1098_v19 }
 0x280   :  { %1028 = vmatprep.subr.bf16.mxu1 %v1290_v0 }
 0x283   :  { %1029 = vmatpush3.bf16.msra.mxu1 %v1099_v53 }
 0x326   :  { %v410_v63 = vpop.f32.mrf.mxu1 }
 0x327   :  { %v411_v1 = vadd.f32 %v871_v62, %v410_v63  ;;  %v889_v63 = vld [vmem:[%s1531_s9] ss:$0 sm:$0xff] }
 0x328   :  { %v992_v2 = vpop.f32.mrf.mxu1 }
 0x329   :  { %v419_v3 = vmul.f32 0.70710677, %v411_v1  ;;  %v417_v11 = vmul.f32 0.5, %v411_v1 }
 0x32a   :  { %v413_v4 = vpop.f32.mrf.mxu1 }
 0x32b   :  { %1112 = verf.f32 %v419_v3  ;;  %v414_v5 = vadd.f32 %v871_v62, %v413_v4  ;;  %v890_v4 = vld [vmem:[%s1532_s10] ss:$0 sm:$0xff] }
 0x32c   :  { %v993_v6 = vpop.f32.mrf.mxu1 }
 0x32d   :  { %v420_v7 = vmul.f32 0.70710677, %v414_v5  ;;  %v418_v13 = vmul.f32 0.5, %v414_v5 }
 0x32f   :  { %1114 = verf.f32 %v420_v7 }
 0x338   :  { %v1113_v8 = vpop.eup %1112 }
 0x339   :  { %v423_v9 = vadd.f32 1.0, %v1113_v8 }
 0x33b   :  { %v425_v16 = vmul.f32 %v423_v9, %v417_v11  ;;  %v1101_v9 = vld [vmem:[#allocation11 + $0x30] sm:$0xff]   ;;  %v1103_v11 = vld [vmem:[#allocation11 + $0x20] sm:$0xff]  }
 0x33c   :  { %v1115_v10 = vpop.eup %1114 }
 0x33d   :  { %v424_v14 = vadd.f32 1.0, %v1115_v10  ;;  %v1102_v10 = vld [vmem:[#allocation11 + $0x28] sm:$0xff]  }
 0x33f   :  { %v426_v17 = vmul.f32 %v424_v14, %v418_v13  ;;  %v1104_v13 = vld [vmem:[#allocation11 + $0x18] sm:$0xff]   ;;  %v1105_v14 = vld [vmem:[#allocation11 + $0x10] sm:$0xff]  }
 0x341   :  { %v427_v18 = vpack.c.bf16 %v426_v17, %v425_v16  ;;  %v1106_v16 = vld [vmem:[#allocation11 + $0x8] sm:$0xff]   ;;  %v1107_v17 = vld [vmem:[#allocation11] sm:$0xff]  }
 0x343   :  { %1011 = vmatmul.mubr.bf16.vlgmr.msra.gmra.mxu0 %v427_v18  ;;  %v891_v18 = vld [vmem:[%s1534_s12] ss:$0 sm:$0xff] }
 0x344   :  { %1050 = vmatprep.mubr.msk.bf16.mxu0 %vm1291_vm0, %v1290_v0  ;;  %1035 = vmatpush3.bf16.msra.mxu0 %v1100_v54 }
 0x345   :  { %1036 = vmatprep.subr.bf16.mxu0 %v1290_v0 }
 0x348   :  { %1037 = vmatpush3.bf16.msra.mxu0 %v1101_v9 }
 0x349   :  { %1038 = vmatprep.subr.bf16.mxu0 %v1290_v0 }
 0x34c   :  { %1039 = vmatpush3.bf16.msra.mxu0 %v1102_v10 }
 0x34d   :  { %1040 = vmatprep.subr.bf16.mxu0 %v1290_v0 }
 0x350   :  { %1041 = vmatpush3.bf16.msra.mxu0 %v1103_v11 }
 0x351   :  { %1042 = vmatprep.subr.bf16.mxu0 %v1290_v0 }
 0x354   :  { %1043 = vmatpush3.bf16.msra.mxu0 %v1104_v13 }
 0x355   :  { %1044 = vmatprep.subr.bf16.mxu0 %v1290_v0 }
 0x358   :  { %1045 = vmatpush3.bf16.msra.mxu0 %v1105_v14 }
 0x359   :  { %1046 = vmatprep.subr.bf16.mxu0 %v1290_v0 }
 0x35c   :  { %1047 = vmatpush3.bf16.msra.mxu0 %v1106_v16 }
 0x35d   :  { %1048 = vmatprep.subr.bf16.mxu0 %v1290_v0 }
 0x360   :  { %1049 = vmatpush3.bf16.msra.mxu0 %v1107_v17 }
 0x403   :  { %v532_v21 = vpop.f32.mrf.mxu0 }
 0x404   :  { %v533_v22 = vadd.f32 %v880_v20, %v532_v21 }
 0x405   :  { %v1012_v23 = vpop.f32.mrf.mxu0 }
 0x406   :  { %v541_v24 = vmul.f32 0.70710677, %v533_v22  ;;  %v539_v30 = vmul.f32 0.5, %v533_v22 }
 0x407   :  { %v535_v25 = vpop.f32.mrf.mxu0 }
 0x408   :  { %1116 = verf.f32 %v541_v24  ;;  %v536_v26 = vadd.f32 %v880_v20, %v535_v25 }
 0x409   :  { %v1013_v27 = vpop.f32.mrf.mxu0 }
 0x40a   :  { %v542_v28 = vmul.f32 0.70710677, %v536_v26  ;;  %v540_v34 = vmul.f32 0.5, %v536_v26 }
 0x40c   :  { %1118 = verf.f32 %v542_v28 }
 0x415   :  { %v1117_v29 = vpop.eup %1116 }
 0x416   :  { %v545_v31 = vadd.f32 1.0, %v1117_v29 }
 0x418   :  { %v547_v32 = vmul.f32 %v545_v31, %v539_v30 }
 0x419   :  { %v1119_v33 = vpop.eup %1118 }
 0x41a   :  { %v546_v35 = vadd.f32 1.0, %v1119_v33  ;;  %v1478_v36 = vadd.f32 %v547_v32, %v1430_v12 }
 0x41c   :  { %v548_v37 = vmul.f32 %v546_v35, %v540_v34  ;;  %551 = vadd.xlane.f32.xlu0 %v1478_v36 }
 0x41e   :  { %v1482_v38 = vadd.f32 %v548_v37, %v1433_v15  ;;  %v900_v37 = vld [vmem:[%s1536_s14] ss:$0 sm:$0xff]  ;;  %s1292_s14 = smov [#allocation13]  }
 0x41f   :  { %s844_s22 = sshll.u32 %s1292_s14, 4  ;;  %s845_s22 = int_to_ptr.vmem [resolvable:$true] %s844_s22 }
 0x420   :  { %553 = vadd.xlane.f32.xlu1 %v1482_v38  ;;  %s1252_s25 = scalar_lea.vmem %s845_s22, 256  ;;  %p1257_p3 = scmp.lt.s32.totalorder %s845_s22, %s845_s22 }
 0x421   :  { %p1253_p2 = scmp.ne.s32.totalorder %s845_s22, %s1252_s25  ;;  %p1258_p4 = scmp.lt.s32.totalorder %s1252_s25, %s1252_s25 }
 0x423   :  { %p1259_p5 = por %p1258_p4, %p1257_p3 }
 0x425   :  { %p1260_p6 = pnand %p1259_p5, %p1253_p2 }
 0x4a5   :  { %v552_v40 = vpop.xlane.xlu0 %551 }
 0x4a6   :  { %v555_v41 = vmul.f32 0.03125, %v552_v40 }
 0x4a8   :  { %v557_v42 = vsub.f32 %v1478_v36, %v555_v41 }
 0x4a9   :  { %v554_v43 = vpop.xlane.xlu1 %553 }
 0x4aa   :  { %v556_v44 = vmul.f32 0.03125, %v554_v43  ;;  %v559_v12 = vsel %vm264_vm1, %v557_v42, 0.0 }
 0x4ab   :  { %v561_v45 = vmul.f32 %v559_v12, %v559_v12 }
 0x4ac   :  { %v558_v46 = vsub.f32 %v1482_v38, %v556_v44 }
 0x4ad   :  { %563 = vadd.xlane.f32.xlu0 %v561_v45 }
 0x4ae   :  { %v560_v15 = vsel %vm264_vm1, %v558_v46, 0.0 }
 0x4af   :  { %v562_v47 = vmul.f32 %v560_v15, %v560_v15 }
 0x4b1   :  { %565 = vadd.xlane.f32.xlu1 %v562_v47 }
 0x536   :  { %v564_v55 = vpop.xlane.xlu0 %563 }
 0x537   :  { %v567_v56 = vmul.f32 0.03125, %v564_v55 }
 0x539   :  { %v569_v57 = vadd.f32 1e-05, %v567_v56 }
 0x53a   :  { %v566_v58 = vpop.xlane.xlu1 %565 }
 0x53b   :  { %1120 = vrsqrt.f32 %v569_v57  ;;  %v568_v59 = vmul.f32 0.03125, %v566_v58 }
 0x53d   :  { %v570_v60 = vadd.f32 1e-05, %v568_v59 }
 0x53f   :  { %1122 = vrsqrt.f32 %v570_v60 }
 0x548   :  { %v1121_v61 = vpop.eup %1120 }
 0x549   :  { %v573_v62 = vmul.f32 %v1121_v61, %v559_v12 }
 0x54b   :  { %v581_v3 = vmul.f32 %v889_v63, %v573_v62 }
 0x54c   :  { %v1123_v1 = vpop.eup %1122 }
 0x54d   :  { %v574_v2 = vmul.f32 %v1123_v1, %v560_v15  ;;  %v589_v6 = vadd.f32 %v890_v4, %v581_v3 }
 0x54f   :  { %v582_v5 = vmul.f32 %v889_v63, %v574_v2 }
 0x551   :  { %v590_v7 = vadd.f32 %v890_v4, %v582_v5 }
 0x553   :  { %v591_v8 = vpack.c.bf16 %v590_v7, %v589_v6 }
 0x555   :  { %1031 = vmatmul.mubr.bf16.vlgmr.msra.gmra.mxu1 %v591_v8 }
 0x615   :  { %v696_v20 = vpop.f32.mrf.mxu1 }
 0x616   :  { %v697_v21 = vadd.f32 %v891_v18, %v696_v20 }
 0x617   :  { %v1032_v22 = vpop.f32.mrf.mxu1 }
 0x618   :  { %v705_v23 = vmul.f32 0.70710677, %v697_v21  ;;  %v703_v0 = vmul.f32 0.5, %v697_v21 }
 0x619   :  { %v699_v24 = vpop.f32.mrf.mxu1 }
 0x61a   :  { %1124 = verf.f32 %v705_v23  ;;  %v700_v25 = vadd.f32 %v891_v18, %v699_v24 }
 0x61b   :  { %v1033_v26 = vpop.f32.mrf.mxu1 }
 0x61c   :  { %v706_v27 = vmul.f32 0.70710677, %v700_v25  ;;  %v704_v31 = vmul.f32 0.5, %v700_v25 }
 0x61e   :  { %1126 = verf.f32 %v706_v27 }
 0x627   :  { %v1125_v28 = vpop.eup %1124 }
 0x628   :  { %v709_v29 = vadd.f32 1.0, %v1125_v28 }
 0x62a   :  { %v711_v33 = vmul.f32 %v709_v29, %v703_v0 }
 0x62b   :  { %v1127_v30 = vpop.eup %1126 }
 0x62c   :  { %v710_v32 = vadd.f32 1.0, %v1127_v30 }
 0x62e   :  { %v712_v34 = vmul.f32 %v710_v32, %v704_v31 }
 0x630   :  { %v713_v35 = vpack.c.bf16 %v712_v34, %v711_v33 }
 0x632   :  { %1051 = vmatmul.mubr.bf16.vlgmr.msra.gmra.mxu0 %v713_v35 }
 0x6f2   :  { %v818_v39 = vpop.f32.mrf.mxu0 }
 0x6f3   :  { %v819_v40 = vadd.f32 %v900_v37, %v818_v39 }
 0x6f4   :  { %v1052_v41 = vpop.f32.mrf.mxu0 }
 0x6f5   :  { %v827_v42 = vmul.f32 0.70710677, %v819_v40  ;;  %v825_v15 = vmul.f32 0.5, %v819_v40 }
 0x6f6   :  { %v821_v43 = vpop.f32.mrf.mxu0 }
 0x6f7   :  { %1128 = verf.f32 %v827_v42  ;;  %v822_v44 = vadd.f32 %v900_v37, %v821_v43 }
 0x6f8   :  { %v1053_v12 = vpop.f32.mrf.mxu0 }
 0x6f9   :  { %v828_v45 = vmul.f32 0.70710677, %v822_v44  ;;  %v826_v51 = vmul.f32 0.5, %v822_v44 }
 0x6fb   :  { %1130 = verf.f32 %v828_v45 }
 0x704   :  { %v1129_v46 = vpop.eup %1128 }
 0x705   :  { %v831_v47 = vadd.f32 1.0, %v1129_v46 }
 0x707   :  { %v833_v48 = vmul.f32 %v831_v47, %v825_v15 }
 0x708   :  { %v1131_v49 = vpop.eup %1130 }
 0x709   :  { %v835_v50 = vadd.f32 %v833_v48, %v1478_v36  ;;  %v832_v52 = vadd.f32 1.0, %v1131_v49 }
 0x70b   :  { %837 = vst [vmem:[#allocation13] sm:$0xff] %v835_v50  ;;  %v834_v19 = vmul.f32 %v832_v52, %v826_v51 }
 0x70d   :  { %v836_v53 = vadd.f32 %v834_v19, %v1482_v38 }
 0x70f   :  { %838 = vst [vmem:[#allocation13 + $0x8] sm:$0xff] %v836_v53 }
 0x710   :  { %1263 = shalt.err (!%p1260_p6)
}
 0x711   :  { %s1293_s26 = smov 128   ;;  %s1294_s27 = smov 8  }
 0x712   :  { %850 = dma.vmem_to_hbm [thread:$0]  %s845_s22, 256, %s1537_s15, [#allocation4], %s1293_s26, %s1293_s26, %s1294_s27  }
 0x713   :  { %1280 = dma.done.wait [#allocation4], 256  }
 0x714   :  { %1281 = vsyncadd [#allocation4], 4294967040 }
 0x715   :  { %854 = vsyncpa [#allocation3], 1 }
 0x716   :  { %855 = vsyncpa [#allocation6], 1 }
 0x717   :  { %856 = vsyncpa [#allocation9], 1 }
 0x718   :  { %857 = vsyncpa [#allocation12], 1 }
 0x719   :  { %858 = vsyncpa [#allocation4], 1 }

</bundles_post_ra>
